<compile_context>
chip_gen: v6e
topology: v6e:2x2x1
jax: 0.10.0
libtpu: 0.0.40
codegen_flags: <defaults>
</compile_context>

<pallas_src>
import functools

import jax
import jax.numpy as jnp
import numpy as np
from jax import lax
from jax.experimental import pallas as pl
from jax.experimental import pallas as _pl_unused  # keep namespace explicit
from jax.experimental.pallas import tpu as pltpu  # noqa: F401  (TPU backend)


def _tree_sum(xs):
    """Balanced pairwise sum of a list of equal-shaped arrays."""
    xs = list(xs)
    while len(xs) > 1:
        nxt = [xs[i] + xs[i + 1] for i in range(0, len(xs) - 1, 2)]
        if len(xs) % 2:
            nxt.append(xs[-1])
        xs = nxt
    return xs[0]


# ----------------------------- Pallas kernel ------------------------------ #
def _sam_kernel(npeds, L, D, H1, B,
                ep_ref, vgg_ref, wA_ref, w2b_ref, w_attn_ref, b_attn_ref,
                out_ref):
    f32 = jnp.float32

    ep = ep_ref[...]                                       # (N, 2)

    # Packed small rows: one aligned (8, H1) load from the last sublane tile.
    tail = wA_ref[D:D + 8, :]                              # (8, H1)
    w_eb0 = tail[0:1, :]                                   # (1, H1)
    w_eb1 = tail[1:2, :]                                   # (1, H1)
    b_tot = tail[2:3, :]                                   # (1, H1)

    # Pedestrian-invariant part of MLP layer 1, computed exactly once:
    #   vgg @ (W_proj^T W1a^T) + (b_proj W1a^T + b_emb W1b^T + b1)
    h1_base = jnp.dot(vgg_ref[...], wA_ref[:D, :],
                      preferred_element_type=f32) + b_tot  # (L, H1)

    # Spatial-embedding contribution folded into MLP-1: two VPU scaled-adds.
    emb_h = ep[:, 0:1] * w_eb0 + ep[:, 1:2] * w_eb1        # (N, H1)

    # Batched MLP over all pedestrians: build (N*L, H1) once, one matmul.
    h1 = jnp.concatenate(
        [jnp.maximum(h1_base + emb_h[n:n + 1, :], 0.0) for n in range(npeds)],
        axis=0)                                            # (N*L, H1)
    attn_h = jnp.maximum(
        jnp.dot(h1, w2b_ref[:H1, :], preferred_element_type=f32)
        + w2b_ref[H1:H1 + 1, :],
        0.0)                                               # (N*L, B)

    # Attention logits per pedestrian: B (L,L)@(L,1) mat-vecs, tree-summed
    # (independent MXU pushes).  Collected as lane-columns so the softmax is
    # batched across pedestrians.
    logit_cols = []
    for n in range(npeds):
        a_n = attn_h[n * L:(n + 1) * L, :]                 # (L, B)
        parts = [jnp.dot(w_attn_ref[b], a_n[:, b:b + 1],
                         preferred_element_type=f32) for b in range(B)]
        logit_cols.append(_tree_sum(parts))                # (L, 1)
    logits = jnp.concatenate(logit_cols, axis=1) + b_attn_ref[...]  # (L, N)

    # Batched softmax over the L (sublane) axis for all pedestrians at once.
    m = jnp.max(logits, axis=0, keepdims=True)             # (1, N)
    e = jnp.exp(logits - m)
    denom = jnp.sum(e, axis=0, keepdims=True)
    # exact reciprocal keeps the reference tolerance; approx=True would eat
    # most of the 2e-4 rtol budget.
    attn_w = e * pl.reciprocal(denom, approx=False)        # (L, N)

    # Weighted sums, then ONE store of the full (N, B) output tile.
    w_exp = jnp.concatenate([attn_w[:, n:n + 1] for n in range(npeds)],
                            axis=0)                        # (N*L, 1)
    weighted = attn_h * w_exp                              # (N*L, B)
    rows = [jnp.sum(weighted[n * L:(n + 1) * L, :], axis=0, keepdims=True)
            for n in range(npeds)]                         # npeds x (1, B)
    out_ref[...] = jnp.concatenate(rows, axis=0).astype(out_ref.dtype)


# ------------------- one-time parameter preprocessing ---------------------- #
def prepare_sam_params(params, *, L, D, D_down, B, E):
    """Fold / transpose / pack the SAM weights once, outside the forward."""
    del E  # implied by parameter shapes
    hi = lax.Precision.HIGHEST
    H1 = int(params["w1"].shape[0])

    w1 = params["w1"]                                   # (H1, D_down + E)
    w1a_t = w1[:, :D_down].T                            # (D_down, H1)
    w1b_t = w1[:, D_down:].T                            # (E, H1)

    # Exact algebra folds (FP summation order only):
    #   (x Wp^T + bp) W1a^T = x (Wp^T W1a^T) + bp W1a^T
    #   (p We^T + be) W1b^T = p (We^T W1b^T) + be W1b^T
    w_comb = jnp.dot(params["w_proj"].T, w1a_t, precision=hi)        # (D, H1)
    w_eb = jnp.dot(params["w_emb"].T, w1b_t, precision=hi)           # (2, H1)
    b_tot = (jnp.dot(params["b_proj"][None, :], w1a_t, precision=hi)
             + jnp.dot(params["b_emb"][None, :], w1b_t, precision=hi)
             + params["b1"][None, :])                                # (1, H1)

    # Pack: rows [0:D] = w_comb, row D = w_eb0, D+1 = w_eb1, D+2 = b_tot,
    # remaining rows of the last 8-row sublane tile are zero padding.
    pad = jnp.zeros((8 - 3, H1), jnp.float32)
    wA = jnp.concatenate([w_comb, w_eb, b_tot, pad],
                         axis=0).astype(jnp.float32)                 # (D+8, H1)

    # b2 rides as the last row of w2^T (row index H1 is 8-aligned).
    w2b = jnp.concatenate([params["w2"].T, params["b2"][None, :]],
                          axis=0).astype(jnp.float32)                # (H1+1, B)

    # W_attn: (L_out=L, L*B) -> (B, L_out, L), w_r[b, o, l] = W[o, l*B + b].
    w_attn_r = jnp.transpose(params["w_attn"].reshape(L, L, B),
                             (2, 0, 1)).astype(jnp.float32)          # (B, L, L)
    b_attn_c = params["b_attn"][:, None].astype(jnp.float32)         # (L, 1)

    return dict(wA=wA, w2b=w2b, w_attn_r=w_attn_r, b_attn_c=b_attn_c)


# ------------------------------ wrapper ----------------------------------- #
def sam_forward_pallas(vgg, end_pos, prep, *, L, D, B):
    """vgg: (1, Hs, Ws, D) with Hs*Ws == L; end_pos: (1, npeds, 2)."""
    npeds = end_pos.shape[1]
    H1 = prep["w2b"].shape[0] - 1
    ep = end_pos[0].astype(jnp.float32)                 # (npeds, 2)
    vgg_flat = vgg.reshape(L, D).astype(jnp.float32)    # (L, D)

    kernel = functools.partial(_sam_kernel, npeds, L, D, H1, B)
    # Single invocation (no grid): every operand is a full-array VMEM block
    # (total padded footprint well under 1 MiB), all pedestrians are processed
    # in one pass, so there is no per-step pipeline overhead and no
    # double-buffering of the constant weights.
    return pl.pallas_call(
        kernel,
        out_shape=jax.ShapeDtypeStruct((npeds, B), jnp.float32),
    )(ep, vgg_flat, prep["wA"], prep["w2b"], prep["w_attn_r"],
      prep["b_attn_c"])


# ------------------------- pure-JAX reference ------------------------------ #
def sam_forward_ref(vgg, end_pos, params, *, L, D, D_down, B, E):
    npeds = end_pos.shape[1]
    ep = end_pos[0]
    emb = ep @ params["w_emb"].T + params["b_emb"]              # (N, E)
    emb = jnp.repeat(emb[:, None, :], L, axis=1)                # (N, L, E)
    vgg_r = jnp.tile(vgg, (npeds, 1, 1, 1)).reshape(-1, D)      # (N*L, D)
    fp = (vgg_r @ params["w_proj"].T + params["b_proj"]).reshape(-1, L, D_down)
    x = jnp.concatenate([fp, emb], axis=2).reshape(-1, D_down + E)
    h1 = jax.nn.relu(x @ params["w1"].T + params["b1"])
    attn_h = jax.nn.relu(h1 @ params["w2"].T + params["b2"]).reshape(npeds, L, B)
    logits = attn_h.reshape(npeds, -1) @ params["w_attn"].T + params["b_attn"]
    attn_w = jax.nn.softmax(logits, axis=1)[:, :, None]
    return jnp.sum(attn_h * attn_w, axis=1)


# --------------------------------- main ------------------------------------ #
if __name__ == "__main__":
    # Small shapes consistent with the module structure.
    L = 16          # attn_L  (= 4 x 4 spatial positions)
    D = 32          # attn_D
    D_down = 8      # ATTN_D_DOWN
    B = 8           # bottleneck_dim
    E = 8           # embedding_dim
    H1 = 512        # hidden dim hard-coded in make_mlp([mlp_pre_dim, 512, B])
    npeds = 3

    key = jax.random.PRNGKey(0)
    ks = jax.random.split(key, 12)

    def linear(kw, kb, out_f, in_f):
        w = jax.random.normal(kw, (out_f, in_f), jnp.float32) / np.sqrt(in_f)
        b = 0.1 * jax.random.normal(kb, (out_f,), jnp.float32)
        return w, b

    w_emb, b_emb = linear(ks[0], ks[1], E, 2)
    w_proj, b_proj = linear(ks[2], ks[3], D_down, D)
    w1, b1 = linear(ks[4], ks[5], H1, D_down + E)
    w2, b2 = linear(ks[6], ks[7], B, H1)
    w_attn, b_attn = linear(ks[8], ks[9], L, L * B)
    params = dict(w_emb=w_emb, b_emb=b_emb, w_proj=w_proj, b_proj=b_proj,
                  w1=w1, b1=b1, w2=w2, b2=b2, w_attn=w_attn, b_attn=b_attn)

    vgg = jax.random.normal(ks[10], (1, 4, 4, D), jnp.float32)
    end_pos = jax.random.normal(ks[11], (1, npeds, 2), jnp.float32)

    # One-time weight preprocessing (hoisted out of the forward pass).
    prep = prepare_sam_params(params, L=L, D=D, D_down=D_down, B=B, E=E)
    prep = jax.tree_util.tree_map(jax.block_until_ready, prep)

    fwd = jax.jit(functools.partial(sam_forward_pallas, L=L, D=D, B=B))
    out = jax.block_until_ready(fwd(vgg, end_pos, prep))

    ref = sam_forward_ref(vgg, end_pos, params,
                          L=L, D=D, D_down=D_down, B=B, E=E)
    # Tolerance slightly loosened vs. 1e-4/1e-5: folding W_proj/W_emb into the
    # first MLP layer changes the FP summation order of that layer.
    np.testing.assert_allclose(np.asarray(out), np.asarray(ref),
                               rtol=2e-4, atol=2e-5)
    print("KERNEL_OK")
</pallas_src>

<mosaic_0001>
module attributes {stable_mosaic.version = 11 : i64} {
  func.func @_sam_kernel(%arg0: memref<3x2xf32, #tpu.memory_space<vmem>>, %arg1: memref<16x32xf32, #tpu.memory_space<vmem>>, %arg2: memref<40x512xf32, #tpu.memory_space<vmem>>, %arg3: memref<513x8xf32, #tpu.memory_space<vmem>>, %arg4: memref<8x16x16xf32, #tpu.memory_space<vmem>>, %arg5: memref<16x1xf32, #tpu.memory_space<vmem>>, %arg6: memref<3x8xf32, #tpu.memory_space<vmem>>) attributes {dimension_semantics = [], scalar_prefetch = 0 : i64, scratch_operands = 0 : i64, tpu.core_type = #tpu.core_type<tc>} {
    %c0 = arith.constant 0 : index
    %c0_0 = arith.constant 0 : index
    %0 = vector.load %arg0[%c0, %c0_0] : memref<3x2xf32, #tpu.memory_space<vmem>>, vector<3x2xf32>
    %c32 = arith.constant 32 : index
    %c0_1 = arith.constant 0 : index
    %1 = vector.load %arg2[%c32, %c0_1] : memref<40x512xf32, #tpu.memory_space<vmem>>, vector<8x512xf32>
    %2 = vector.extract_strided_slice %1 {offsets = [0, 0], sizes = [1, 512], strides = [1, 1]} : vector<8x512xf32> to vector<1x512xf32>
    %3 = vector.extract_strided_slice %1 {offsets = [1, 0], sizes = [1, 512], strides = [1, 1]} : vector<8x512xf32> to vector<1x512xf32>
    %4 = vector.extract_strided_slice %1 {offsets = [2, 0], sizes = [1, 512], strides = [1, 1]} : vector<8x512xf32> to vector<1x512xf32>
    %c0_2 = arith.constant 0 : index
    %c0_3 = arith.constant 0 : index
    %5 = vector.load %arg1[%c0_2, %c0_3] : memref<16x32xf32, #tpu.memory_space<vmem>>, vector<16x32xf32>
    %c0_4 = arith.constant 0 : index
    %c0_5 = arith.constant 0 : index
    %6 = vector.load %arg2[%c0_4, %c0_5] : memref<40x512xf32, #tpu.memory_space<vmem>>, vector<32x512xf32>
    %cst = arith.constant dense<0.000000e+00> : vector<16x512xf32>
    %7 = tpu.matmul %5, %6, %cst {dimension_numbers = #tpu.dot_dimension_numbers<[1], [0], [0], [1], [0, 0, 1, 1], [], []>} : vector<16x32xf32>, vector<32x512xf32>, vector<16x512xf32> -> vector<16x512xf32>
    %8 = vector.broadcast %4 : vector<1x512xf32> to vector<16x512xf32>
    %9 = arith.addf %7, %8 : vector<16x512xf32>
    %10 = vector.extract_strided_slice %0 {offsets = [0, 0], sizes = [3, 1], strides = [1, 1]} : vector<3x2xf32> to vector<3x1xf32>
    %11 = vector.broadcast %10 : vector<3x1xf32> to vector<3x512xf32>
    %12 = vector.broadcast %2 : vector<1x512xf32> to vector<3x512xf32>
    %13 = arith.mulf %11, %12 : vector<3x512xf32>
    %14 = vector.extract_strided_slice %0 {offsets = [0, 1], sizes = [3, 1], strides = [1, 1]} : vector<3x2xf32> to vector<3x1xf32>
    %15 = vector.broadcast %14 : vector<3x1xf32> to vector<3x512xf32>
    %16 = vector.broadcast %3 : vector<1x512xf32> to vector<3x512xf32>
    %17 = arith.mulf %15, %16 : vector<3x512xf32>
    %18 = arith.addf %13, %17 : vector<3x512xf32>
    %19 = vector.extract_strided_slice %18 {offsets = [0, 0], sizes = [1, 512], strides = [1, 1]} : vector<3x512xf32> to vector<1x512xf32>
    %20 = vector.broadcast %19 : vector<1x512xf32> to vector<16x512xf32>
    %21 = arith.addf %9, %20 : vector<16x512xf32>
    %cst_6 = arith.constant 0.000000e+00 : f32
    %22 = vector.broadcast %cst_6 : f32 to vector<16x512xf32>
    %23 = arith.maximumf %21, %22 : vector<16x512xf32>
    %24 = vector.extract_strided_slice %18 {offsets = [1, 0], sizes = [1, 512], strides = [1, 1]} : vector<3x512xf32> to vector<1x512xf32>
    %25 = vector.broadcast %24 : vector<1x512xf32> to vector<16x512xf32>
    %26 = arith.addf %9, %25 : vector<16x512xf32>
    %cst_7 = arith.constant 0.000000e+00 : f32
    %27 = vector.broadcast %cst_7 : f32 to vector<16x512xf32>
    %28 = arith.maximumf %26, %27 : vector<16x512xf32>
    %29 = vector.extract_strided_slice %18 {offsets = [2, 0], sizes = [1, 512], strides = [1, 1]} : vector<3x512xf32> to vector<1x512xf32>
    %30 = vector.broadcast %29 : vector<1x512xf32> to vector<16x512xf32>
    %31 = arith.addf %9, %30 : vector<16x512xf32>
    %cst_8 = arith.constant 0.000000e+00 : f32
    %32 = vector.broadcast %cst_8 : f32 to vector<16x512xf32>
    %33 = arith.maximumf %31, %32 : vector<16x512xf32>
    %34 = tpu.concatenate %23, %28, %33 in 0 : vector<16x512xf32>, vector<16x512xf32>, vector<16x512xf32> -> vector<48x512xf32>
    %c0_9 = arith.constant 0 : index
    %c0_10 = arith.constant 0 : index
    %35 = vector.load %arg3[%c0_9, %c0_10] : memref<513x8xf32, #tpu.memory_space<vmem>>, vector<512x8xf32>
    %cst_11 = arith.constant dense<0.000000e+00> : vector<48x8xf32>
    %36 = tpu.matmul %34, %35, %cst_11 {dimension_numbers = #tpu.dot_dimension_numbers<[1], [0], [0], [1], [0, 0, 1, 1], [], []>} : vector<48x512xf32>, vector<512x8xf32>, vector<48x8xf32> -> vector<48x8xf32>
    %c512 = arith.constant 512 : index
    %c0_12 = arith.constant 0 : index
    %37 = vector.load %arg3[%c512, %c0_12] : memref<513x8xf32, #tpu.memory_space<vmem>>, vector<1x8xf32>
    %38 = vector.broadcast %37 : vector<1x8xf32> to vector<48x8xf32>
    %39 = arith.addf %36, %38 : vector<48x8xf32>
    %cst_13 = arith.constant 0.000000e+00 : f32
    %40 = vector.broadcast %cst_13 : f32 to vector<48x8xf32>
    %41 = arith.maximumf %39, %40 : vector<48x8xf32>
    %42 = vector.extract_strided_slice %41 {offsets = [0, 0], sizes = [16, 8], strides = [1, 1]} : vector<48x8xf32> to vector<16x8xf32>
    %c0_14 = arith.constant 0 : index
    %c0_15 = arith.constant 0 : index
    %c0_16 = arith.constant 0 : index
    %43 = vector.load %arg4[%c0_14, %c0_15, %c0_16] : memref<8x16x16xf32, #tpu.memory_space<vmem>>, vector<1x16x16xf32>
    %44 = vector.shape_cast %43 : vector<1x16x16xf32> to vector<16x16xf32>
    %45 = vector.extract_strided_slice %42 {offsets = [0, 0], sizes = [16, 1], strides = [1, 1]} : vector<16x8xf32> to vector<16x1xf32>
    %cst_17 = arith.constant dense<0.000000e+00> : vector<16x1xf32>
    %46 = tpu.matmul %44, %45, %cst_17 {dimension_numbers = #tpu.dot_dimension_numbers<[1], [0], [0], [1], [0, 0, 1, 1], [], []>} : vector<16x16xf32>, vector<16x1xf32>, vector<16x1xf32> -> vector<16x1xf32>
    %c1 = arith.constant 1 : index
    %c0_18 = arith.constant 0 : index
    %c0_19 = arith.constant 0 : index
    %47 = vector.load %arg4[%c1, %c0_18, %c0_19] : memref<8x16x16xf32, #tpu.memory_space<vmem>>, vector<1x16x16xf32>
    %48 = vector.shape_cast %47 : vector<1x16x16xf32> to vector<16x16xf32>
    %49 = vector.extract_strided_slice %42 {offsets = [0, 1], sizes = [16, 1], strides = [1, 1]} : vector<16x8xf32> to vector<16x1xf32>
    %cst_20 = arith.constant dense<0.000000e+00> : vector<16x1xf32>
    %50 = tpu.matmul %48, %49, %cst_20 {dimension_numbers = #tpu.dot_dimension_numbers<[1], [0], [0], [1], [0, 0, 1, 1], [], []>} : vector<16x16xf32>, vector<16x1xf32>, vector<16x1xf32> -> vector<16x1xf32>
    %c2 = arith.constant 2 : index
    %c0_21 = arith.constant 0 : index
    %c0_22 = arith.constant 0 : index
    %51 = vector.load %arg4[%c2, %c0_21, %c0_22] : memref<8x16x16xf32, #tpu.memory_space<vmem>>, vector<1x16x16xf32>
    %52 = vector.shape_cast %51 : vector<1x16x16xf32> to vector<16x16xf32>
    %53 = vector.extract_strided_slice %42 {offsets = [0, 2], sizes = [16, 1], strides = [1, 1]} : vector<16x8xf32> to vector<16x1xf32>
    %cst_23 = arith.constant dense<0.000000e+00> : vector<16x1xf32>
    %54 = tpu.matmul %52, %53, %cst_23 {dimension_numbers = #tpu.dot_dimension_numbers<[1], [0], [0], [1], [0, 0, 1, 1], [], []>} : vector<16x16xf32>, vector<16x1xf32>, vector<16x1xf32> -> vector<16x1xf32>
    %c3 = arith.constant 3 : index
    %c0_24 = arith.constant 0 : index
    %c0_25 = arith.constant 0 : index
    %55 = vector.load %arg4[%c3, %c0_24, %c0_25] : memref<8x16x16xf32, #tpu.memory_space<vmem>>, vector<1x16x16xf32>
    %56 = vector.shape_cast %55 : vector<1x16x16xf32> to vector<16x16xf32>
    %57 = vector.extract_strided_slice %42 {offsets = [0, 3], sizes = [16, 1], strides = [1, 1]} : vector<16x8xf32> to vector<16x1xf32>
    %cst_26 = arith.constant dense<0.000000e+00> : vector<16x1xf32>
    %58 = tpu.matmul %56, %57, %cst_26 {dimension_numbers = #tpu.dot_dimension_numbers<[1], [0], [0], [1], [0, 0, 1, 1], [], []>} : vector<16x16xf32>, vector<16x1xf32>, vector<16x1xf32> -> vector<16x1xf32>
    %c4 = arith.constant 4 : index
    %c0_27 = arith.constant 0 : index
    %c0_28 = arith.constant 0 : index
    %59 = vector.load %arg4[%c4, %c0_27, %c0_28] : memref<8x16x16xf32, #tpu.memory_space<vmem>>, vector<1x16x16xf32>
    %60 = vector.shape_cast %59 : vector<1x16x16xf32> to vector<16x16xf32>
    %61 = vector.extract_strided_slice %42 {offsets = [0, 4], sizes = [16, 1], strides = [1, 1]} : vector<16x8xf32> to vector<16x1xf32>
    %cst_29 = arith.constant dense<0.000000e+00> : vector<16x1xf32>
    %62 = tpu.matmul %60, %61, %cst_29 {dimension_numbers = #tpu.dot_dimension_numbers<[1], [0], [0], [1], [0, 0, 1, 1], [], []>} : vector<16x16xf32>, vector<16x1xf32>, vector<16x1xf32> -> vector<16x1xf32>
    %c5 = arith.constant 5 : index
    %c0_30 = arith.constant 0 : index
    %c0_31 = arith.constant 0 : index
    %63 = vector.load %arg4[%c5, %c0_30, %c0_31] : memref<8x16x16xf32, #tpu.memory_space<vmem>>, vector<1x16x16xf32>
    %64 = vector.shape_cast %63 : vector<1x16x16xf32> to vector<16x16xf32>
    %65 = vector.extract_strided_slice %42 {offsets = [0, 5], sizes = [16, 1], strides = [1, 1]} : vector<16x8xf32> to vector<16x1xf32>
    %cst_32 = arith.constant dense<0.000000e+00> : vector<16x1xf32>
    %66 = tpu.matmul %64, %65, %cst_32 {dimension_numbers = #tpu.dot_dimension_numbers<[1], [0], [0], [1], [0, 0, 1, 1], [], []>} : vector<16x16xf32>, vector<16x1xf32>, vector<16x1xf32> -> vector<16x1xf32>
    %c6 = arith.constant 6 : index
    %c0_33 = arith.constant 0 : index
    %c0_34 = arith.constant 0 : index
    %67 = vector.load %arg4[%c6, %c0_33, %c0_34] : memref<8x16x16xf32, #tpu.memory_space<vmem>>, vector<1x16x16xf32>
    %68 = vector.shape_cast %67 : vector<1x16x16xf32> to vector<16x16xf32>
    %69 = vector.extract_strided_slice %42 {offsets = [0, 6], sizes = [16, 1], strides = [1, 1]} : vector<16x8xf32> to vector<16x1xf32>
    %cst_35 = arith.constant dense<0.000000e+00> : vector<16x1xf32>
    %70 = tpu.matmul %68, %69, %cst_35 {dimension_numbers = #tpu.dot_dimension_numbers<[1], [0], [0], [1], [0, 0, 1, 1], [], []>} : vector<16x16xf32>, vector<16x1xf32>, vector<16x1xf32> -> vector<16x1xf32>
    %c7 = arith.constant 7 : index
    %c0_36 = arith.constant 0 : index
    %c0_37 = arith.constant 0 : index
    %71 = vector.load %arg4[%c7, %c0_36, %c0_37] : memref<8x16x16xf32, #tpu.memory_space<vmem>>, vector<1x16x16xf32>
    %72 = vector.shape_cast %71 : vector<1x16x16xf32> to vector<16x16xf32>
    %73 = vector.extract_strided_slice %42 {offsets = [0, 7], sizes = [16, 1], strides = [1, 1]} : vector<16x8xf32> to vector<16x1xf32>
    %cst_38 = arith.constant dense<0.000000e+00> : vector<16x1xf32>
    %74 = tpu.matmul %72, %73, %cst_38 {dimension_numbers = #tpu.dot_dimension_numbers<[1], [0], [0], [1], [0, 0, 1, 1], [], []>} : vector<16x16xf32>, vector<16x1xf32>, vector<16x1xf32> -> vector<16x1xf32>
    %75 = arith.addf %46, %50 : vector<16x1xf32>
    %76 = arith.addf %54, %58 : vector<16x1xf32>
    %77 = arith.addf %62, %66 : vector<16x1xf32>
    %78 = arith.addf %70, %74 : vector<16x1xf32>
    %79 = arith.addf %75, %76 : vector<16x1xf32>
    %80 = arith.addf %77, %78 : vector<16x1xf32>
    %81 = arith.addf %79, %80 : vector<16x1xf32>
    %82 = vector.extract_strided_slice %41 {offsets = [16, 0], sizes = [16, 8], strides = [1, 1]} : vector<48x8xf32> to vector<16x8xf32>
    %c0_39 = arith.constant 0 : index
    %c0_40 = arith.constant 0 : index
    %c0_41 = arith.constant 0 : index
    %83 = vector.load %arg4[%c0_39, %c0_40, %c0_41] : memref<8x16x16xf32, #tpu.memory_space<vmem>>, vector<1x16x16xf32>
    %84 = vector.shape_cast %83 : vector<1x16x16xf32> to vector<16x16xf32>
    %85 = vector.extract_strided_slice %82 {offsets = [0, 0], sizes = [16, 1], strides = [1, 1]} : vector<16x8xf32> to vector<16x1xf32>
    %cst_42 = arith.constant dense<0.000000e+00> : vector<16x1xf32>
    %86 = tpu.matmul %84, %85, %cst_42 {dimension_numbers = #tpu.dot_dimension_numbers<[1], [0], [0], [1], [0, 0, 1, 1], [], []>} : vector<16x16xf32>, vector<16x1xf32>, vector<16x1xf32> -> vector<16x1xf32>
    %c1_43 = arith.constant 1 : index
    %c0_44 = arith.constant 0 : index
    %c0_45 = arith.constant 0 : index
    %87 = vector.load %arg4[%c1_43, %c0_44, %c0_45] : memref<8x16x16xf32, #tpu.memory_space<vmem>>, vector<1x16x16xf32>
    %88 = vector.shape_cast %87 : vector<1x16x16xf32> to vector<16x16xf32>
    %89 = vector.extract_strided_slice %82 {offsets = [0, 1], sizes = [16, 1], strides = [1, 1]} : vector<16x8xf32> to vector<16x1xf32>
    %cst_46 = arith.constant dense<0.000000e+00> : vector<16x1xf32>
    %90 = tpu.matmul %88, %89, %cst_46 {dimension_numbers = #tpu.dot_dimension_numbers<[1], [0], [0], [1], [0, 0, 1, 1], [], []>} : vector<16x16xf32>, vector<16x1xf32>, vector<16x1xf32> -> vector<16x1xf32>
    %c2_47 = arith.constant 2 : index
    %c0_48 = arith.constant 0 : index
    %c0_49 = arith.constant 0 : index
    %91 = vector.load %arg4[%c2_47, %c0_48, %c0_49] : memref<8x16x16xf32, #tpu.memory_space<vmem>>, vector<1x16x16xf32>
    %92 = vector.shape_cast %91 : vector<1x16x16xf32> to vector<16x16xf32>
    %93 = vector.extract_strided_slice %82 {offsets = [0, 2], sizes = [16, 1], strides = [1, 1]} : vector<16x8xf32> to vector<16x1xf32>
    %cst_50 = arith.constant dense<0.000000e+00> : vector<16x1xf32>
    %94 = tpu.matmul %92, %93, %cst_50 {dimension_numbers = #tpu.dot_dimension_numbers<[1], [0], [0], [1], [0, 0, 1, 1], [], []>} : vector<16x16xf32>, vector<16x1xf32>, vector<16x1xf32> -> vector<16x1xf32>
    %c3_51 = arith.constant 3 : index
    %c0_52 = arith.constant 0 : index
    %c0_53 = arith.constant 0 : index
    %95 = vector.load %arg4[%c3_51, %c0_52, %c0_53] : memref<8x16x16xf32, #tpu.memory_space<vmem>>, vector<1x16x16xf32>
    %96 = vector.shape_cast %95 : vector<1x16x16xf32> to vector<16x16xf32>
    %97 = vector.extract_strided_slice %82 {offsets = [0, 3], sizes = [16, 1], strides = [1, 1]} : vector<16x8xf32> to vector<16x1xf32>
    %cst_54 = arith.constant dense<0.000000e+00> : vector<16x1xf32>
    %98 = tpu.matmul %96, %97, %cst_54 {dimension_numbers = #tpu.dot_dimension_numbers<[1], [0], [0], [1], [0, 0, 1, 1], [], []>} : vector<16x16xf32>, vector<16x1xf32>, vector<16x1xf32> -> vector<16x1xf32>
    %c4_55 = arith.constant 4 : index
    %c0_56 = arith.constant 0 : index
    %c0_57 = arith.constant 0 : index
    %99 = vector.load %arg4[%c4_55, %c0_56, %c0_57] : memref<8x16x16xf32, #tpu.memory_space<vmem>>, vector<1x16x16xf32>
    %100 = vector.shape_cast %99 : vector<1x16x16xf32> to vector<16x16xf32>
    %101 = vector.extract_strided_slice %82 {offsets = [0, 4], sizes = [16, 1], strides = [1, 1]} : vector<16x8xf32> to vector<16x1xf32>
    %cst_58 = arith.constant dense<0.000000e+00> : vector<16x1xf32>
    %102 = tpu.matmul %100, %101, %cst_58 {dimension_numbers = #tpu.dot_dimension_numbers<[1], [0], [0], [1], [0, 0, 1, 1], [], []>} : vector<16x16xf32>, vector<16x1xf32>, vector<16x1xf32> -> vector<16x1xf32>
    %c5_59 = arith.constant 5 : index
    %c0_60 = arith.constant 0 : index
    %c0_61 = arith.constant 0 : index
    %103 = vector.load %arg4[%c5_59, %c0_60, %c0_61] : memref<8x16x16xf32, #tpu.memory_space<vmem>>, vector<1x16x16xf32>
    %104 = vector.shape_cast %103 : vector<1x16x16xf32> to vector<16x16xf32>
    %105 = vector.extract_strided_slice %82 {offsets = [0, 5], sizes = [16, 1], strides = [1, 1]} : vector<16x8xf32> to vector<16x1xf32>
    %cst_62 = arith.constant dense<0.000000e+00> : vector<16x1xf32>
    %106 = tpu.matmul %104, %105, %cst_62 {dimension_numbers = #tpu.dot_dimension_numbers<[1], [0], [0], [1], [0, 0, 1, 1], [], []>} : vector<16x16xf32>, vector<16x1xf32>, vector<16x1xf32> -> vector<16x1xf32>
    %c6_63 = arith.constant 6 : index
    %c0_64 = arith.constant 0 : index
    %c0_65 = arith.constant 0 : index
    %107 = vector.load %arg4[%c6_63, %c0_64, %c0_65] : memref<8x16x16xf32, #tpu.memory_space<vmem>>, vector<1x16x16xf32>
    %108 = vector.shape_cast %107 : vector<1x16x16xf32> to vector<16x16xf32>
    %109 = vector.extract_strided_slice %82 {offsets = [0, 6], sizes = [16, 1], strides = [1, 1]} : vector<16x8xf32> to vector<16x1xf32>
    %cst_66 = arith.constant dense<0.000000e+00> : vector<16x1xf32>
    %110 = tpu.matmul %108, %109, %cst_66 {dimension_numbers = #tpu.dot_dimension_numbers<[1], [0], [0], [1], [0, 0, 1, 1], [], []>} : vector<16x16xf32>, vector<16x1xf32>, vector<16x1xf32> -> vector<16x1xf32>
    %c7_67 = arith.constant 7 : index
    %c0_68 = arith.constant 0 : index
    %c0_69 = arith.constant 0 : index
    %111 = vector.load %arg4[%c7_67, %c0_68, %c0_69] : memref<8x16x16xf32, #tpu.memory_space<vmem>>, vector<1x16x16xf32>
    %112 = vector.shape_cast %111 : vector<1x16x16xf32> to vector<16x16xf32>
    %113 = vector.extract_strided_slice %82 {offsets = [0, 7], sizes = [16, 1], strides = [1, 1]} : vector<16x8xf32> to vector<16x1xf32>
    %cst_70 = arith.constant dense<0.000000e+00> : vector<16x1xf32>
    %114 = tpu.matmul %112, %113, %cst_70 {dimension_numbers = #tpu.dot_dimension_numbers<[1], [0], [0], [1], [0, 0, 1, 1], [], []>} : vector<16x16xf32>, vector<16x1xf32>, vector<16x1xf32> -> vector<16x1xf32>
    %115 = arith.addf %86, %90 : vector<16x1xf32>
    %116 = arith.addf %94, %98 : vector<16x1xf32>
    %117 = arith.addf %102, %106 : vector<16x1xf32>
    %118 = arith.addf %110, %114 : vector<16x1xf32>
    %119 = arith.addf %115, %116 : vector<16x1xf32>
    %120 = arith.addf %117, %118 : vector<16x1xf32>
    %121 = arith.addf %119, %120 : vector<16x1xf32>
    %122 = vector.extract_strided_slice %41 {offsets = [32, 0], sizes = [16, 8], strides = [1, 1]} : vector<48x8xf32> to vector<16x8xf32>
    %c0_71 = arith.constant 0 : index
    %c0_72 = arith.constant 0 : index
    %c0_73 = arith.constant 0 : index
    %123 = vector.load %arg4[%c0_71, %c0_72, %c0_73] : memref<8x16x16xf32, #tpu.memory_space<vmem>>, vector<1x16x16xf32>
    %124 = vector.shape_cast %123 : vector<1x16x16xf32> to vector<16x16xf32>
    %125 = vector.extract_strided_slice %122 {offsets = [0, 0], sizes = [16, 1], strides = [1, 1]} : vector<16x8xf32> to vector<16x1xf32>
    %cst_74 = arith.constant dense<0.000000e+00> : vector<16x1xf32>
    %126 = tpu.matmul %124, %125, %cst_74 {dimension_numbers = #tpu.dot_dimension_numbers<[1], [0], [0], [1], [0, 0, 1, 1], [], []>} : vector<16x16xf32>, vector<16x1xf32>, vector<16x1xf32> -> vector<16x1xf32>
    %c1_75 = arith.constant 1 : index
    %c0_76 = arith.constant 0 : index
    %c0_77 = arith.constant 0 : index
    %127 = vector.load %arg4[%c1_75, %c0_76, %c0_77] : memref<8x16x16xf32, #tpu.memory_space<vmem>>, vector<1x16x16xf32>
    %128 = vector.shape_cast %127 : vector<1x16x16xf32> to vector<16x16xf32>
    %129 = vector.extract_strided_slice %122 {offsets = [0, 1], sizes = [16, 1], strides = [1, 1]} : vector<16x8xf32> to vector<16x1xf32>
    %cst_78 = arith.constant dense<0.000000e+00> : vector<16x1xf32>
    %130 = tpu.matmul %128, %129, %cst_78 {dimension_numbers = #tpu.dot_dimension_numbers<[1], [0], [0], [1], [0, 0, 1, 1], [], []>} : vector<16x16xf32>, vector<16x1xf32>, vector<16x1xf32> -> vector<16x1xf32>
    %c2_79 = arith.constant 2 : index
    %c0_80 = arith.constant 0 : index
    %c0_81 = arith.constant 0 : index
    %131 = vector.load %arg4[%c2_79, %c0_80, %c0_81] : memref<8x16x16xf32, #tpu.memory_space<vmem>>, vector<1x16x16xf32>
    %132 = vector.shape_cast %131 : vector<1x16x16xf32> to vector<16x16xf32>
    %133 = vector.extract_strided_slice %122 {offsets = [0, 2], sizes = [16, 1], strides = [1, 1]} : vector<16x8xf32> to vector<16x1xf32>
    %cst_82 = arith.constant dense<0.000000e+00> : vector<16x1xf32>
    %134 = tpu.matmul %132, %133, %cst_82 {dimension_numbers = #tpu.dot_dimension_numbers<[1], [0], [0], [1], [0, 0, 1, 1], [], []>} : vector<16x16xf32>, vector<16x1xf32>, vector<16x1xf32> -> vector<16x1xf32>
    %c3_83 = arith.constant 3 : index
    %c0_84 = arith.constant 0 : index
    %c0_85 = arith.constant 0 : index
    %135 = vector.load %arg4[%c3_83, %c0_84, %c0_85] : memref<8x16x16xf32, #tpu.memory_space<vmem>>, vector<1x16x16xf32>
    %136 = vector.shape_cast %135 : vector<1x16x16xf32> to vector<16x16xf32>
    %137 = vector.extract_strided_slice %122 {offsets = [0, 3], sizes = [16, 1], strides = [1, 1]} : vector<16x8xf32> to vector<16x1xf32>
    %cst_86 = arith.constant dense<0.000000e+00> : vector<16x1xf32>
    %138 = tpu.matmul %136, %137, %cst_86 {dimension_numbers = #tpu.dot_dimension_numbers<[1], [0], [0], [1], [0, 0, 1, 1], [], []>} : vector<16x16xf32>, vector<16x1xf32>, vector<16x1xf32> -> vector<16x1xf32>
    %c4_87 = arith.constant 4 : index
    %c0_88 = arith.constant 0 : index
    %c0_89 = arith.constant 0 : index
    %139 = vector.load %arg4[%c4_87, %c0_88, %c0_89] : memref<8x16x16xf32, #tpu.memory_space<vmem>>, vector<1x16x16xf32>
    %140 = vector.shape_cast %139 : vector<1x16x16xf32> to vector<16x16xf32>
    %141 = vector.extract_strided_slice %122 {offsets = [0, 4], sizes = [16, 1], strides = [1, 1]} : vector<16x8xf32> to vector<16x1xf32>
    %cst_90 = arith.constant dense<0.000000e+00> : vector<16x1xf32>
    %142 = tpu.matmul %140, %141, %cst_90 {dimension_numbers = #tpu.dot_dimension_numbers<[1], [0], [0], [1], [0, 0, 1, 1], [], []>} : vector<16x16xf32>, vector<16x1xf32>, vector<16x1xf32> -> vector<16x1xf32>
    %c5_91 = arith.constant 5 : index
    %c0_92 = arith.constant 0 : index
    %c0_93 = arith.constant 0 : index
    %143 = vector.load %arg4[%c5_91, %c0_92, %c0_93] : memref<8x16x16xf32, #tpu.memory_space<vmem>>, vector<1x16x16xf32>
    %144 = vector.shape_cast %143 : vector<1x16x16xf32> to vector<16x16xf32>
    %145 = vector.extract_strided_slice %122 {offsets = [0, 5], sizes = [16, 1], strides = [1, 1]} : vector<16x8xf32> to vector<16x1xf32>
    %cst_94 = arith.constant dense<0.000000e+00> : vector<16x1xf32>
    %146 = tpu.matmul %144, %145, %cst_94 {dimension_numbers = #tpu.dot_dimension_numbers<[1], [0], [0], [1], [0, 0, 1, 1], [], []>} : vector<16x16xf32>, vector<16x1xf32>, vector<16x1xf32> -> vector<16x1xf32>
    %c6_95 = arith.constant 6 : index
    %c0_96 = arith.constant 0 : index
    %c0_97 = arith.constant 0 : index
    %147 = vector.load %arg4[%c6_95, %c0_96, %c0_97] : memref<8x16x16xf32, #tpu.memory_space<vmem>>, vector<1x16x16xf32>
    %148 = vector.shape_cast %147 : vector<1x16x16xf32> to vector<16x16xf32>
    %149 = vector.extract_strided_slice %122 {offsets = [0, 6], sizes = [16, 1], strides = [1, 1]} : vector<16x8xf32> to vector<16x1xf32>
    %cst_98 = arith.constant dense<0.000000e+00> : vector<16x1xf32>
    %150 = tpu.matmul %148, %149, %cst_98 {dimension_numbers = #tpu.dot_dimension_numbers<[1], [0], [0], [1], [0, 0, 1, 1], [], []>} : vector<16x16xf32>, vector<16x1xf32>, vector<16x1xf32> -> vector<16x1xf32>
    %c7_99 = arith.constant 7 : index
    %c0_100 = arith.constant 0 : index
    %c0_101 = arith.constant 0 : index
    %151 = vector.load %arg4[%c7_99, %c0_100, %c0_101] : memref<8x16x16xf32, #tpu.memory_space<vmem>>, vector<1x16x16xf32>
    %152 = vector.shape_cast %151 : vector<1x16x16xf32> to vector<16x16xf32>
    %153 = vector.extract_strided_slice %122 {offsets = [0, 7], sizes = [16, 1], strides = [1, 1]} : vector<16x8xf32> to vector<16x1xf32>
    %cst_102 = arith.constant dense<0.000000e+00> : vector<16x1xf32>
    %154 = tpu.matmul %152, %153, %cst_102 {dimension_numbers = #tpu.dot_dimension_numbers<[1], [0], [0], [1], [0, 0, 1, 1], [], []>} : vector<16x16xf32>, vector<16x1xf32>, vector<16x1xf32> -> vector<16x1xf32>
    %155 = arith.addf %126, %130 : vector<16x1xf32>
    %156 = arith.addf %134, %138 : vector<16x1xf32>
    %157 = arith.addf %142, %146 : vector<16x1xf32>
    %158 = arith.addf %150, %154 : vector<16x1xf32>
    %159 = arith.addf %155, %156 : vector<16x1xf32>
    %160 = arith.addf %157, %158 : vector<16x1xf32>
    %161 = arith.addf %159, %160 : vector<16x1xf32>
    %162 = tpu.concatenate %81, %121, %161 in 1 : vector<16x1xf32>, vector<16x1xf32>, vector<16x1xf32> -> vector<16x3xf32>
    %c0_103 = arith.constant 0 : index
    %c0_104 = arith.constant 0 : index
    %163 = vector.load %arg5[%c0_103, %c0_104] : memref<16x1xf32, #tpu.memory_space<vmem>>, vector<16x1xf32>
    %164 = vector.broadcast %163 : vector<16x1xf32> to vector<16x3xf32>
    %165 = arith.addf %162, %164 : vector<16x3xf32>
    %cst_105 = arith.constant dense<0xFF800000> : vector<3xf32>
    %166 = vector.multi_reduction <maximumf>, %165, %cst_105 [0] : vector<16x3xf32> to vector<3xf32>
    %167 = vector.shape_cast %166 : vector<3xf32> to vector<1x3xf32>
    %168 = vector.broadcast %167 : vector<1x3xf32> to vector<16x3xf32>
    %169 = arith.subf %165, %168 : vector<16x3xf32>
    %170 = math.exp %169 : vector<16x3xf32>
    %cst_106 = arith.constant dense<0.000000e+00> : vector<3xf32>
    %171 = vector.multi_reduction <add>, %170, %cst_106 [0] : vector<16x3xf32> to vector<3xf32>
    %172 = vector.shape_cast %171 : vector<3xf32> to vector<1x3xf32>
    %173 = tpu.reciprocal %172 : vector<1x3xf32> -> vector<1x3xf32>
    %174 = vector.broadcast %173 : vector<1x3xf32> to vector<16x3xf32>
    %175 = arith.mulf %170, %174 : vector<16x3xf32>
    %176 = vector.extract_strided_slice %175 {offsets = [0, 0], sizes = [16, 1], strides = [1, 1]} : vector<16x3xf32> to vector<16x1xf32>
    %177 = vector.extract_strided_slice %175 {offsets = [0, 1], sizes = [16, 1], strides = [1, 1]} : vector<16x3xf32> to vector<16x1xf32>
    %178 = vector.extract_strided_slice %175 {offsets = [0, 2], sizes = [16, 1], strides = [1, 1]} : vector<16x3xf32> to vector<16x1xf32>
    %179 = tpu.concatenate %176, %177, %178 in 0 : vector<16x1xf32>, vector<16x1xf32>, vector<16x1xf32> -> vector<48x1xf32>
    %180 = vector.broadcast %179 : vector<48x1xf32> to vector<48x8xf32>
    %181 = arith.mulf %41, %180 : vector<48x8xf32>
    %182 = vector.extract_strided_slice %181 {offsets = [0, 0], sizes = [16, 8], strides = [1, 1]} : vector<48x8xf32> to vector<16x8xf32>
    %cst_107 = arith.constant dense<0.000000e+00> : vector<8xf32>
    %183 = vector.multi_reduction <add>, %182, %cst_107 [0] : vector<16x8xf32> to vector<8xf32>
    %184 = vector.shape_cast %183 : vector<8xf32> to vector<1x8xf32>
    %185 = vector.extract_strided_slice %181 {offsets = [16, 0], sizes = [16, 8], strides = [1, 1]} : vector<48x8xf32> to vector<16x8xf32>
    %cst_108 = arith.constant dense<0.000000e+00> : vector<8xf32>
    %186 = vector.multi_reduction <add>, %185, %cst_108 [0] : vector<16x8xf32> to vector<8xf32>
    %187 = vector.shape_cast %186 : vector<8xf32> to vector<1x8xf32>
    %188 = vector.extract_strided_slice %181 {offsets = [32, 0], sizes = [16, 8], strides = [1, 1]} : vector<48x8xf32> to vector<16x8xf32>
    %cst_109 = arith.constant dense<0.000000e+00> : vector<8xf32>
    %189 = vector.multi_reduction <add>, %188, %cst_109 [0] : vector<16x8xf32> to vector<8xf32>
    %190 = vector.shape_cast %189 : vector<8xf32> to vector<1x8xf32>
    %191 = tpu.concatenate %184, %187, %190 in 0 : vector<1x8xf32>, vector<1x8xf32>, vector<1x8xf32> -> vector<3x8xf32>
    %c0_110 = arith.constant 0 : index
    %c0_111 = arith.constant 0 : index
    %192 = vector.load %arg6[%c0_110, %c0_111] : memref<3x8xf32, #tpu.memory_space<vmem>>, vector<3x8xf32>
    tpu.vector_store %arg6[%c0_110, %c0_111], %191 {strides = array<i32>} : memref<3x8xf32, #tpu.memory_space<vmem>>, vector<3x8xf32>,
    return
  }
}

</mosaic_0001>

<bundles_post_ra>
// kernel: sam_forward_pallas.1
= control target key start
LH: loop header
LB: loop body
LE: loop exit
PB: predicated region body
PF: predicated region fallthrough
CT: control target
= control target key end

     0   :  { %vm63_vm0 = vcmask 261120   ;;  %v3288_v17 = vmov 0.0   ;;  %v3289_v22 = vmov 0   ;;  %v3290_v31 = vmov 1   ;;  %s3992_s0 = inlined_call_operand.vmem [shape: f32[3,2], index: 0, kind: input, shape index: {}]   ;;  %s3993_s1 = inlined_call_operand.vmem [shape: f32[16,32], index: 1, kind: input, shape index: {}]   ;;  %s3994_s2 = inlined_call_operand.vmem [shape: f32[40,512], index: 2, kind: input, shape index: {}]   ;;  %s3995_s3 = inlined_call_operand.vmem [shape: f32[513,8], index: 3, kind: input, shape index: {}]   ;;  %s3996_s4 = inlined_call_operand.vmem [shape: f32[8,16,16], index: 4, kind: input, shape index: {}]   ;;  %s3997_s5 = inlined_call_operand.vmem [shape: f32[16,1], index: 5, kind: input, shape index: {}]   ;;  %s3998_s6 = inlined_call_operand.hbm [shape: f32[3,8], index: 6, kind: output, shape index: {}]  }
   0x1   :  { %v44_v0 = vld [vmem:[%s3994_s2 + $0x68] sm:$0xff]  ;;  %v46_v1 = vld [vmem:[%s3994_s2 + $0x78] sm:$0xff]  ;;  %v43_v2 = vld [vmem:[%s3994_s2 + $0x60] sm:$0xff]  ;;  %134 = vmatprep.mubr.f32.mxu0 %v3288_v17  ;;  %211 = vmatprep.mubr.f32.mxu1 %v3288_v17 }
   0x2   :  { %94 = vmatprep.subr.mxu0 %v44_v0  ;;  %171 = vmatprep.subr.mxu1 %v46_v1  ;;  %v45_v3 = vld [vmem:[%s3994_s2 + $0x70] sm:$0xff]  ;;  %v40_v4 = vld [vmem:[%s3994_s2 + $0x48] sm:$0xff]  ;;  %v42_v5 = vld [vmem:[%s3994_s2 + $0x58] sm:$0xff] }
   0x3   :  { %95 = vmatpush1.msra.mxu0 %v43_v2  ;;  %172 = vmatpush1.msra.mxu1 %v45_v3  ;;  %v39_v6 = vld [vmem:[%s3994_s2 + $0x40] sm:$0xff]  ;;  %v41_v7 = vld [vmem:[%s3994_s2 + $0x50] sm:$0xff]  ;;  %v36_v8 = vld [vmem:[%s3994_s2 + $0x28] sm:$0xff] }
   0x4   :  { %96 = vmatprep.subr.mxu0 %v40_v4  ;;  %173 = vmatprep.subr.mxu1 %v42_v5  ;;  %v38_v9 = vld [vmem:[%s3994_s2 + $0x38] sm:$0xff]  ;;  %v35_v10 = vld [vmem:[%s3994_s2 + $0x20] sm:$0xff]  ;;  %v37_v11 = vld [vmem:[%s3994_s2 + $0x30] sm:$0xff] }
   0x5   :  { %97 = vmatpush1.msra.mxu0 %v39_v6  ;;  %174 = vmatpush1.msra.mxu1 %v41_v7  ;;  %v32_v12 = vld [vmem:[%s3994_s2 + $0x8] sm:$0xff]  ;;  %v34_v13 = vld [vmem:[%s3994_s2 + $0x18] sm:$0xff]  ;;  %v31_v14 = vld [vmem:[%s3994_s2] sm:$0xff] }
   0x6   :  { %98 = vmatprep.subr.mxu0 %v36_v8  ;;  %175 = vmatprep.subr.mxu1 %v38_v9  ;;  %v33_v15 = vld [vmem:[%s3994_s2 + $0x10] sm:$0xff]  ;;  %v29_v16 = vld [vmem:[%s3993_s1] sm:$0xff]  ;;  %v404_v18 = vld [vmem:[%s3995_s3 + $0xf8] sm:$0xff] }
   0x7   :  { %99 = vmatpush1.msra.mxu0 %v35_v10  ;;  %176 = vmatpush1.msra.mxu1 %v37_v11  ;;  %v24_v19 = vld [vmem:[%s3992_s0] sm:$0x7]  ;;  %v436_v20 = vld [vmem:[%s3995_s3 + $0x1f8] sm:$0xff]  ;;  %v30_v21 = vld [vmem:[%s3993_s1 + $0x8] sm:$0xff] }
   0x8   :  { %100 = vmatprep.subr.mxu0 %v32_v12  ;;  %177 = vmatprep.subr.mxu1 %v34_v13  ;;  %v388_v23 = vld [vmem:[%s3995_s3 + $0x78] sm:$0xff]  ;;  %v403_v25 = vld [vmem:[%s3995_s3 + $0xf0] sm:$0xff]  ;;  %v402_v29 = vld [vmem:[%s3995_s3 + $0xe8] sm:$0xff] }
   0x9   :  { %101 = vmatpush1.msra.mxu0 %v31_v14  ;;  %178 = vmatpush1.msra.mxu1 %v33_v15  ;;  %v420_v24 = vld [vmem:[%s3995_s3 + $0x178] sm:$0xff]  ;;  %v435_v26 = vld [vmem:[%s3995_s3 + $0x1f0] sm:$0xff]  ;;  %v434_v30 = vld [vmem:[%s3995_s3 + $0x1e8] sm:$0xff] }
   0xa   :  { %2812 = vmatmul.mubr.msk.f32.vlgmr.msra.gmra.mxu0 %vm63_vm0, %v29_v16  ;;  %2814 = vmatmul.mubr.msk.f32.vlgmr.msra.gmra.mxu1 %vm63_vm0, %v29_v16  ;;  %v387_v27 = vld [vmem:[%s3995_s3 + $0x70] sm:$0xff]  ;;  %v386_v32 = vld [vmem:[%s3995_s3 + $0x68] sm:$0xff]  ;;  %v401_v34 = vld [vmem:[%s3995_s3 + $0xe0] sm:$0xff] }
   0xb   :  { %140 = vmatprep.mubr.f32.mxu0 %v3288_v17  ;;  %217 = vmatprep.mubr.f32.mxu1 %v3288_v17  ;;  %v419_v28 = vld [vmem:[%s3995_s3 + $0x170] sm:$0xff]  ;;  %v418_v33 = vld [vmem:[%s3995_s3 + $0x168] sm:$0xff]  ;;  %v433_v35 = vld [vmem:[%s3995_s3 + $0x1e0] sm:$0xff] }
   0xc   :  { %3256 = vset.pattern.permute.xlu0 %v3289_v22  ;;  %2879 = vmatprep.subr.mxu0 %v404_v18  ;;  %v385_v36 = vld [vmem:[%s3995_s3 + $0x60] sm:$0xff]  ;;  %v400_v38 = vld [vmem:[%s3995_s3 + $0xd8] sm:$0xff] }
   0xd   :  { %226 = vperm.xlu0 %3256, %v24_v19   ;;  %2929 = vmatprep.subr.mxu1 %v436_v20  ;;  %v417_v37 = vld [vmem:[%s3995_s3 + $0x160] sm:$0xff]  ;;  %v432_v39 = vld [vmem:[%s3995_s3 + $0x1d8] sm:$0xff] }
   0xe   :  { %2813 = vmatmul.mubr.msk.f32.gmra.mxu0 %vm63_vm0, %v30_v21  ;;  %2815 = vmatmul.mubr.msk.f32.gmra.mxu1 %vm63_vm0, %v30_v21  ;;  %v384_v40 = vld [vmem:[%s3995_s3 + $0x58] sm:$0xff] }
   0xf   :  { %2880 = vmatpush3.msra.mxu0 %v388_v23  ;;  %2930 = vmatpush3.msra.mxu1 %v420_v24  ;;  %v416_v41 = vld [vmem:[%s3995_s3 + $0x158] sm:$0xff] }
  0x10   :  { %2881 = vmatprep.subr.mxu0 %v403_v25  ;;  %2931 = vmatprep.subr.mxu1 %v435_v26 }
  0x11   :  { %3257 = vset.pattern.permute.xlu0 %v3290_v31  ;;  %2882 = vmatpush3.msra.mxu0 %v387_v27 }
  0x12   :  { %250 = vperm.xlu0 %3257, %v24_v19   ;;  %2932 = vmatpush3.msra.mxu1 %v419_v28 }
  0x13   :  { %2883 = vmatprep.subr.mxu0 %v402_v29  ;;  %2933 = vmatprep.subr.mxu1 %v434_v30 }
  0x14   :  { %2884 = vmatpush3.msra.mxu0 %v386_v32  ;;  %2934 = vmatpush3.msra.mxu1 %v418_v33 }
  0x15   :  { %2885 = vmatprep.subr.mxu0 %v401_v34  ;;  %2935 = vmatprep.subr.mxu1 %v433_v35 }
  0x16   :  { %11 = vsyncpa [#allocation3], 0  ;;  %2886 = vmatpush3.msra.mxu0 %v385_v36  ;;  %2936 = vmatpush3.msra.mxu1 %v417_v37  ;;  %v399_v42 = vld [vmem:[%s3995_s3 + $0xd0] sm:$0xff]  ;;  %v398_v46 = vld [vmem:[%s3995_s3 + $0xc8] sm:$0xff]  ;;  %s3291_s0 = smov 125   ;;  %s3292_s18 = smov 127  }
  0x17   :  { %v431_v43 = vld [vmem:[%s3995_s3 + $0x1d0] sm:$0xff]  ;;  %2887 = vmatprep.subr.mxu0 %v400_v38  ;;  %2937 = vmatprep.subr.mxu1 %v432_v39  ;;  %v430_v47 = vld [vmem:[%s3995_s3 + $0x1c8] sm:$0xff]  ;;  %v397_v50 = vld [vmem:[%s3995_s3 + $0xc0] sm:$0xff]  ;;  %s3294_s19 = smov 123   ;;  %vm651_vm1 = vcmask 130048   ;;  %s3295_s23 = smov 126  }
  0x18   :  { %v383_v44 = vld [vmem:[%s3995_s3 + $0x50] sm:$0xff]  ;;  %2888 = vmatpush3.msra.mxu0 %v384_v40  ;;  %2938 = vmatpush3.msra.mxu1 %v416_v41  ;;  %v382_v48 = vld [vmem:[%s3995_s3 + $0x48] sm:$0xff]  ;;  %v429_v51 = vld [vmem:[%s3995_s3 + $0x1c0] sm:$0xff]  ;;  %s3296_s24 = smov 124   ;;  %s3297_s25 = smov 122   ;;  %vm2676_vm2 = vcmask 7168  }
  0x19   :  { %v415_v45 = vld [vmem:[%s3995_s3 + $0x150] sm:$0xff]  ;;  %2889 = vmatprep.subr.mxu0 %v399_v42  ;;  %2939 = vmatprep.subr.mxu1 %v431_v43  ;;  %v414_v49 = vld [vmem:[%s3995_s3 + $0x148] sm:$0xff]  ;;  %v381_v52 = vld [vmem:[%s3995_s3 + $0x40] sm:$0xff]  ;;  %s3299_s7 = smov 2   ;;  %vm2679_vm3 = vcmask 15360   ;;  %vm2696_vm4 = vcmask 23552  }
  0x1a   :  { %2890 = vmatpush3.msra.mxu0 %v383_v44  ;;  %2940 = vmatpush3.msra.mxu1 %v415_v45  ;;  %v413_v53 = vld [vmem:[%s3995_s3 + $0x140] sm:$0xff]  ;;  %v396_v54 = vld [vmem:[%s3995_s3 + $0xb8] sm:$0xff]  ;;  %v395_v58 = vld [vmem:[%s3995_s3 + $0xb0] sm:$0xff]  ;;  %vm2764_vm5 = vcmask 64512   ;;  %vm2792_vm6 = vcmask 1040384   ;;  %vm2794_vm7 = vcmask 1041408  }
  0x1b   :  { %2891 = vmatprep.subr.mxu0 %v398_v46  ;;  %2941 = vmatprep.subr.mxu1 %v430_v47  ;;  %v428_v55 = vld [vmem:[%s3995_s3 + $0x1b8] sm:$0xff]  ;;  %v427_v59 = vld [vmem:[%s3995_s3 + $0x1b0] sm:$0xff]  ;;  %v394_v62 = vld [vmem:[%s3995_s3 + $0xa8] sm:$0xff]  ;;  %vm2796_vm8 = vcmask 59392  }
  0x1c   :  { %2892 = vmatpush3.msra.mxu0 %v382_v48  ;;  %2942 = vmatpush3.msra.mxu1 %v414_v49  ;;  %v380_v56 = vld [vmem:[%s3995_s3 + $0x38] sm:$0xff]  ;;  %v379_v60 = vld [vmem:[%s3995_s3 + $0x30] sm:$0xff]  ;;  %v426_v63 = vld [vmem:[%s3995_s3 + $0x1a8] sm:$0xff] }
  0x1d   :  { %2893 = vmatprep.subr.mxu0 %v397_v50  ;;  %2943 = vmatprep.subr.mxu1 %v429_v51  ;;  %v412_v57 = vld [vmem:[%s3995_s3 + $0x138] sm:$0xff]  ;;  %v411_v61 = vld [vmem:[%s3995_s3 + $0x130] sm:$0xff]  ;;  %v378_v0 = vld [vmem:[%s3995_s3 + $0x28] sm:$0xff] }
  0x1e   :  { %2894 = vmatpush3.msra.mxu0 %v381_v52  ;;  %2944 = vmatpush3.msra.mxu1 %v413_v53  ;;  %v410_v1 = vld [vmem:[%s3995_s3 + $0x128] sm:$0xff]  ;;  %v393_v2 = vld [vmem:[%s3995_s3 + $0xa0] sm:$0xff]  ;;  %v392_v6 = vld [vmem:[%s3995_s3 + $0x98] sm:$0xff] }
  0x1f   :  { %2895 = vmatprep.subr.mxu0 %v396_v54  ;;  %2945 = vmatprep.subr.mxu1 %v428_v55  ;;  %v425_v3 = vld [vmem:[%s3995_s3 + $0x1a0] sm:$0xff]  ;;  %v424_v7 = vld [vmem:[%s3995_s3 + $0x198] sm:$0xff]  ;;  %v391_v10 = vld [vmem:[%s3995_s3 + $0x90] sm:$0xff] }
  0x20   :  { %2896 = vmatpush3.msra.mxu0 %v380_v56  ;;  %2946 = vmatpush3.msra.mxu1 %v412_v57  ;;  %v377_v4 = vld [vmem:[%s3995_s3 + $0x20] sm:$0xff]  ;;  %v376_v8 = vld [vmem:[%s3995_s3 + $0x18] sm:$0xff]  ;;  %v423_v11 = vld [vmem:[%s3995_s3 + $0x190] sm:$0xff] }
  0x21   :  { %2897 = vmatprep.subr.mxu0 %v395_v58  ;;  %2947 = vmatprep.subr.mxu1 %v427_v59  ;;  %v409_v5 = vld [vmem:[%s3995_s3 + $0x120] sm:$0xff]  ;;  %v408_v9 = vld [vmem:[%s3995_s3 + $0x118] sm:$0xff]  ;;  %v375_v12 = vld [vmem:[%s3995_s3 + $0x10] sm:$0xff] }
  0x22   :  { %2898 = vmatpush3.msra.mxu0 %v379_v60  ;;  %2948 = vmatpush3.msra.mxu1 %v411_v61  ;;  %v407_v13 = vld [vmem:[%s3995_s3 + $0x110] sm:$0xff]  ;;  %v390_v14 = vld [vmem:[%s3995_s3 + $0x88] sm:$0xff]  ;;  %v389_v18 = vld [vmem:[%s3995_s3 + $0x80] sm:$0xff] }
  0x23   :  { %2899 = vmatprep.subr.mxu0 %v394_v62  ;;  %2949 = vmatprep.subr.mxu1 %v426_v63  ;;  %v422_v15 = vld [vmem:[%s3995_s3 + $0x188] sm:$0xff]  ;;  %v421_v19 = vld [vmem:[%s3995_s3 + $0x180] sm:$0xff]  ;;  %v27_v28 = vld [vmem:[%s3994_s2 + $0x90] sm:$0xff] }
  0x24   :  { %2900 = vmatpush3.msra.mxu0 %v378_v0  ;;  %2950 = vmatpush3.msra.mxu1 %v410_v1  ;;  %v374_v16 = vld [vmem:[%s3995_s3 + $0x8] sm:$0xff]  ;;  %v373_v20 = vld [vmem:[%s3995_s3] sm:$0xff]  ;;  %v28_v30 = vld [vmem:[%s3994_s2 + $0x98] sm:$0xff] }
  0x25   :  { %3258 = vset.pattern.permute.xlu1 %v3289_v22  ;;  %3259 = vset.pattern.permute.xlu0 %v3289_v22  ;;  %v406_v17 = vld [vmem:[%s3995_s3 + $0x108] sm:$0xff]  ;;  %v405_v21 = vld [vmem:[%s3995_s3 + $0x100] sm:$0xff]  ;;  %v47_v22 = vlaneseq }
  0x26   :  { %2901 = vmatprep.subr.mxu0 %v393_v2  ;;  %2951 = vmatprep.subr.mxu1 %v425_v3  ;;  %v25_v27 = vld [vmem:[%s3994_s2 + $0x80] sm:$0xff]  ;;  %v26_v29 = vld [vmem:[%s3994_s2 + $0x88] sm:$0xff] }
  0x27   :  { %2902 = vmatpush3.msra.mxu0 %v377_v4  ;;  %2952 = vmatpush3.msra.mxu1 %v409_v5  ;;  %v48_v23 = vshrl.u32 %v47_v22, 7 }
  0x28   :  { %2903 = vmatprep.subr.mxu0 %v392_v6  ;;  %2953 = vmatprep.subr.mxu1 %v424_v7 }
  0x29   :  { %2904 = vmatpush3.msra.mxu0 %v376_v8  ;;  %2954 = vmatpush3.msra.mxu1 %v408_v9  ;;  %v231_v25 = vsub.s32 0, %v48_v23  ;;  %v3592_v26 = vsub.s32 1, %v48_v23  ;;  %v3610_v40 = vsub.s32 2, %v48_v23 }
  0x2a   :  { %2905 = vmatprep.subr.mxu0 %v391_v10  ;;  %2955 = vmatprep.subr.mxu1 %v423_v11 }
  0x2b   :  { %2906 = vmatpush3.msra.mxu0 %v375_v12  ;;  %2956 = vmatpush3.msra.mxu1 %v407_v13  ;;  %v232_v31 = vrot.slane %v25_v27, %v231_v25  ;;  %v256_v32 = vrot.slane %v25_v27, %v3592_v26  ;;  %v240_v33 = vrot.slane %v27_v28, %v231_v25 }
  0x2c   :  { %2907 = vmatprep.subr.mxu0 %v390_v14  ;;  %2957 = vmatprep.subr.mxu1 %v422_v15  ;;  %v264_v34 = vrot.slane %v27_v28, %v3592_v26  ;;  %v236_v36 = vrot.slane %v26_v29, %v231_v25  ;;  %v260_v37 = vrot.slane %v26_v29, %v3592_v26 }
  0x2d   :  { %2908 = vmatpush3.msra.mxu0 %v374_v16  ;;  %2958 = vmatpush3.msra.mxu1 %v406_v17  ;;  %v244_v38 = vrot.slane %v28_v30, %v231_v25  ;;  %v268_v39 = vrot.slane %v28_v30, %v3592_v26  ;;  %v50_v49 = vrot.slane %v25_v27, %v3610_v40 }
  0x2e   :  { %2909 = vmatprep.subr.mxu0 %v389_v18  ;;  %2959 = vmatprep.subr.mxu1 %v421_v19  ;;  %v58_v50 = vrot.slane %v27_v28, %v3610_v40  ;;  %v54_v53 = vrot.slane %v26_v29, %v3610_v40  ;;  %v62_v54 = vrot.slane %v28_v30, %v3610_v40 }
  0x2f   :  { %2910 = vmatpush3.msra.mxu0 %v373_v20  ;;  %2960 = vmatpush3.msra.mxu1 %v405_v21 }
  0x88   :  { %v227_v24 = vpop.permute.xlu0 %226 }
  0x89   :  { %v245_v41 = vmul.f32 %v232_v31, %v227_v24  ;;  %v247_v43 = vmul.f32 %v240_v33, %v227_v24  ;;  %v246_v45 = vmul.f32 %v236_v36, %v227_v24  ;;  %v248_v47 = vmul.f32 %v244_v38, %v227_v24 }
  0x8d   :  { %v251_v35 = vpop.permute.xlu0 %250 }
  0x8e   :  { %v269_v42 = vmul.f32 %v256_v32, %v251_v35  ;;  %v271_v44 = vmul.f32 %v264_v34, %v251_v35  ;;  %v270_v46 = vmul.f32 %v260_v37, %v251_v35  ;;  %v272_v48 = vmul.f32 %v268_v39, %v251_v35 }
  0x90   :  { %v3614_v51 = vadd.f32 %v269_v42, %v245_v41  ;;  %v3616_v52 = vadd.f32 %v271_v44, %v247_v43  ;;  %v274_v57 = vadd.f32 %v270_v46, %v246_v45  ;;  %v276_v58 = vadd.f32 %v272_v48, %v248_v47 }
  0x92   :  { %v280_v61 = vrot.slane %v3614_v51, %v231_v25  ;;  %v288_v62 = vrot.slane %v3616_v52, %v231_v25  ;;  %v284_v7 = vrot.slane %v274_v57, %v231_v25  ;;  %v292_v8 = vrot.slane %v276_v58, %v231_v25 }
  0x93   :  { %v316_v17 = vrot.slane %v274_v57, %v3592_v26  ;;  %v324_v18 = vrot.slane %v276_v58, %v3592_v26  ;;  %v312_v32 = vrot.slane %v3614_v51, %v3592_v26  ;;  %v320_v33 = vrot.slane %v3616_v52, %v3592_v26 }
  0x94   :  { %v348_v43 = vrot.slane %v274_v57, %v3610_v40  ;;  %v356_v26 = vrot.slane %v276_v58, %v3610_v40 }
  0xca   :  { %v136_v55 = vpop.f32.mrf.mxu0  ;;  %v213_v56 = vpop.f32.mrf.mxu1 }
  0xcb   :  { %v3620_v59 = vadd.f32 %v136_v55, %v50_v49  ;;  %v3622_v60 = vadd.f32 %v213_v56, %v58_v50  ;;  %v352_v55 = vrot.slane %v3616_v52, %v3610_v40 }
  0xcc   :  { %v138_v63 = vpop.f32.mrf.mxu0  ;;  %v215_v0 = vpop.f32.mrf.mxu1 }
  0xcd   :  { %v139_v1 = vadd.f32 %v138_v63, %v54_v53  ;;  %v216_v2 = vadd.f32 %v215_v0, %v62_v54  ;;  %v293_v3 = vadd.f32 %v280_v61, %v3620_v59  ;;  %v295_v4 = vadd.f32 %v288_v62, %v3622_v60 }
  0xce   :  { %v142_v5 = vpop.f32.mrf.mxu0  ;;  %v219_v6 = vpop.f32.mrf.mxu1  ;;  %v325_v36 = vadd.f32 %v312_v32, %v3620_v59  ;;  %v327_v37 = vadd.f32 %v320_v33, %v3622_v60 }
  0xcf   :  { %v3628_v9 = vadd.f32 %v142_v5, %v50_v49  ;;  %v3630_v10 = vadd.f32 %v219_v6, %v58_v50  ;;  %v294_v13 = vadd.f32 %v284_v7, %v139_v1  ;;  %v296_v14 = vadd.f32 %v292_v8, %v216_v2 }
  0xd0   :  { %v144_v11 = vpop.f32.mrf.mxu0  ;;  %v221_v12 = vpop.f32.mrf.mxu1  ;;  %v301_v19 = vmax.f32 %v293_v3, 0.0  ;;  %v303_v20 = vmax.f32 %v295_v4, 0.0  ;;  %v326_v28 = vadd.f32 %v316_v17, %v139_v1  ;;  %v328_v29 = vadd.f32 %v324_v18, %v216_v2 }
  0xd1   :  { %v145_v15 = vadd.f32 %v144_v11, %v54_v53  ;;  %v222_v16 = vadd.f32 %v221_v12, %v62_v54  ;;  %v302_v21 = vmax.f32 %v294_v13, 0.0  ;;  %v304_v22 = vmax.f32 %v296_v14, 0.0 }
  0xd2   :  { %v297_v25 = vadd.f32 %v280_v61, %v3628_v9  ;;  %v299_v27 = vadd.f32 %v288_v62, %v3630_v10  ;;  %v334_v38 = vmax.f32 %v326_v28, 0.0  ;;  %v336_v39 = vmax.f32 %v328_v29, 0.0 }
  0xd3   :  { %v298_v23 = vadd.f32 %v284_v7, %v145_v15  ;;  %v300_v24 = vadd.f32 %v292_v8, %v222_v16  ;;  %506 = vmatprep.mubr.f32.mxu0 %v302_v21  ;;  %601 = vmatprep.mubr.f32.mxu1 %v304_v22  ;;  %v330_v41 = vadd.f32 %v316_v17, %v145_v15  ;;  %v333_v44 = vmax.f32 %v325_v36, 0.0  ;;  %v3657_v7 = vld [vmem:[%s3995_s3 + $0x200] ss:$0 sm:$0xff]  ;;  %s3293_s3 = smov 121  }
  0xd4   :  { %507 = vmatmul.mubr.f32.vlgmr.msra.gmra.mxu0 %v301_v19  ;;  %602 = vmatmul.mubr.f32.vlgmr.msra.gmra.mxu1 %v303_v20  ;;  %v305_v34 = vmax.f32 %v297_v25, 0.0  ;;  %v307_v35 = vmax.f32 %v299_v27, 0.0  ;;  %v332_v42 = vadd.f32 %v324_v18, %v222_v16  ;;  %v335_v45 = vmax.f32 %v327_v37, 0.0  ;;  %v3679_v25 = vld [vmem:[%s3996_s4 + $0x30] sm:$0xff] }
  0xd5   :  { %v306_v30 = vmax.f32 %v298_v23, 0.0  ;;  %v308_v31 = vmax.f32 %v300_v24, 0.0  ;;  %v329_v46 = vadd.f32 %v312_v32, %v3628_v9  ;;  %v331_v47 = vadd.f32 %v320_v33, %v3630_v10  ;;  %v3674_v24 = vld [vmem:[%s3996_s4 + $0x10] sm:$0xff] }
  0xd6   :  { %v338_v48 = vmax.f32 %v330_v41, 0.0  ;;  %v340_v49 = vmax.f32 %v332_v42, 0.0  ;;  %v358_v50 = vadd.f32 %v348_v43, %v139_v1  ;;  %v360_v53 = vadd.f32 %v356_v26, %v216_v2 }
  0xd7   :  { %511 = vmatprep.mubr.f32.mxu0 %v306_v30  ;;  %606 = vmatprep.mubr.f32.mxu1 %v308_v31  ;;  %v344_v54 = vrot.slane %v3614_v51, %v3610_v40  ;;  %v337_v56 = vmax.f32 %v329_v46, 0.0  ;;  %v339_v57 = vmax.f32 %v331_v47, 0.0  ;;  %v359_v61 = vadd.f32 %v352_v55, %v3622_v60 }
  0xd8   :  { %512 = vmatmul.mubr.f32.gmra.mxu0 %v305_v34  ;;  %607 = vmatmul.mubr.f32.gmra.mxu1 %v307_v35  ;;  %v366_v62 = vmax.f32 %v358_v50, 0.0  ;;  %v368_v63 = vmax.f32 %v360_v53, 0.0  ;;  %v362_v0 = vadd.f32 %v348_v43, %v145_v15  ;;  %v364_v1 = vadd.f32 %v356_v26, %v222_v16 }
  0xd9   :  { %516 = vmatprep.mubr.f32.mxu0 %v334_v38  ;;  %611 = vmatprep.mubr.f32.mxu1 %v336_v39  ;;  %v357_v58 = vadd.f32 %v344_v54, %v3620_v59  ;;  %v367_v2 = vmax.f32 %v359_v61, 0.0  ;;  %v361_v40 = vadd.f32 %v344_v54, %v3628_v9  ;;  %v363_v52 = vadd.f32 %v352_v55, %v3630_v10 }
  0xda   :  { %v370_v3 = vmax.f32 %v362_v0, 0.0  ;;  %v372_v4 = vmax.f32 %v364_v1, 0.0 }
  0xdb   :  { %v365_v51 = vmax.f32 %v357_v58, 0.0  ;;  %v369_v59 = vmax.f32 %v361_v40, 0.0  ;;  %v371_v60 = vmax.f32 %v363_v52, 0.0 }
  0xdc   :  { %517 = vmatmul.mubr.f32.gmra.mxu0 %v333_v44  ;;  %612 = vmatmul.mubr.f32.gmra.mxu1 %v335_v45 }
  0xdd   :  { %521 = vmatprep.mubr.f32.mxu0 %v338_v48  ;;  %616 = vmatprep.mubr.f32.mxu1 %v340_v49 }
  0xe0   :  { %522 = vmatmul.mubr.f32.gmra.mxu0 %v337_v56  ;;  %617 = vmatmul.mubr.f32.gmra.mxu1 %v339_v57 }
  0xe1   :  { %526 = vmatprep.mubr.f32.mxu0 %v366_v62  ;;  %621 = vmatprep.mubr.f32.mxu1 %v368_v63 }
  0xe4   :  { %527 = vmatmul.mubr.f32.gmra.mxu0 %v365_v51  ;;  %622 = vmatmul.mubr.f32.gmra.mxu1 %v367_v2 }
  0xe5   :  { %531 = vmatprep.mubr.f32.mxu0 %v370_v3  ;;  %626 = vmatprep.mubr.f32.mxu1 %v372_v4 }
  0xe8   :  { %532 = vmatmul.mubr.f32.gmra.mxu0 %v369_v59  ;;  %627 = vmatmul.mubr.f32.gmra.mxu1 %v371_v60 }
  0xe9   :  { %3079 = vmatprep.mubr.msk.f32.mxu0 %vm651_vm1, %v3674_v24  ;;  %3086 = vmatprep.mubr.msk.f32.mxu1 %vm651_vm1, %v3679_v25 }
 0x194   :  { %v2911_v5 = vpop.f32.mrf.mxu0  ;;  %v2961_v6 = vpop.f32.mrf.mxu1 }
 0x196   :  { %v2912_v8 = vpop.f32.mrf.mxu0  ;;  %v2962_v9 = vpop.f32.mrf.mxu1 }
 0x197   :  { %v2913_v10 = vadd.f32 %v2912_v8, %v2911_v5  ;;  %v2963_v13 = vadd.f32 %v2962_v9, %v2961_v6  ;;  %v3782_v6 = vld [vmem:[%s3996_s4 + $0x18] sm:$0xff] }
 0x198   :  { %v2914_v11 = vpop.f32.mrf.mxu0  ;;  %v2964_v16 = vpop.f32.mrf.mxu1 }
 0x199   :  { %v509_v12 = vadd.f32 %v2913_v10, %v3657_v7  ;;  %v3796_v10 = vld [vmem:[%s3996_s4 + $0x38] sm:$0xff] }
 0x19a   :  { %v2915_v14 = vpop.f32.mrf.mxu0  ;;  %v2965_v19 = vpop.f32.mrf.mxu1 }
 0x19b   :  { %v604_v15 = vadd.f32 %v2963_v13, %v509_v12  ;;  %v2916_v18 = vadd.f32 %v2915_v14, %v2914_v11  ;;  %v2966_v22 = vadd.f32 %v2965_v19, %v2964_v16  ;;  %v3803_v13 = vld [vmem:[%s3996_s4 + $0x70] sm:$0xff]  ;;  %v3808_v16 = vld [vmem:[%s3996_s4 + $0x58] sm:$0xff] }
 0x19c   :  { %v2917_v21 = vpop.f32.mrf.mxu0  ;;  %v2967_v28 = vpop.f32.mrf.mxu1 }
 0x19d   :  { %v3660_v17 = vmax.f32 %v604_v15, 0.0  ;;  %v514_v20 = vadd.f32 %v2916_v18, %v3657_v7  ;;  %v3813_v18 = vld [vmem:[%s3996_s4 + $0x78] sm:$0xff] }
 0x19e   :  { %v2918_v27 = vpop.f32.mrf.mxu0  ;;  %v2968_v31 = vpop.f32.mrf.mxu1 }
 0x19f   :  { %739 = vrot.lane.b32.xlu0 %v3660_v17, %s3291_s0  ;;  %645 = vrot.lane.b32.xlu1 %v3660_v17, %s3292_s18  ;;  %v609_v23 = vadd.f32 %v2966_v22, %v514_v20  ;;  %v2919_v30 = vadd.f32 %v2918_v27, %v2917_v21  ;;  %v2969_v33 = vadd.f32 %v2968_v31, %v2967_v28  ;;  %v3826_v21 = vld [vmem:[%s3996_s4] sm:$0xff]  ;;  %v3843_v27 = vld [vmem:[%s3996_s4 + $0x28] sm:$0xff] }
 0x1a0   :  { %v2920_v35 = vpop.f32.mrf.mxu0  ;;  %v2970_v38 = vpop.f32.mrf.mxu1  ;;  %v3831_v22 = vld [vmem:[%s3996_s4 + $0x20] sm:$0xff] }
 0x1a1   :  { %v3689_v29 = vmax.f32 %v609_v23, 0.0  ;;  %v519_v32 = vadd.f32 %v2919_v30, %v3657_v7  ;;  %v3838_v23 = vld [vmem:[%s3996_s4 + $0x8] sm:$0xff]  ;;  %v3856_v31 = vld [vmem:[%s3996_s4 + $0x40] sm:$0xff] }
 0x1a2   :  { %v2921_v37 = vpop.f32.mrf.mxu0  ;;  %v2971_v41 = vpop.f32.mrf.mxu1 }
 0x1a3   :  { %925 = vrot.lane.b32.xlu0 %v3660_v17, %s3293_s3  ;;  %832 = vrot.lane.b32.xlu1 %v3660_v17, %s3294_s19  ;;  %v614_v34 = vadd.f32 %v2969_v33, %v519_v32  ;;  %v2922_v39 = vadd.f32 %v2921_v37, %v2920_v35  ;;  %v2972_v26 = vadd.f32 %v2971_v41, %v2970_v38  ;;  %v3861_v32 = vld [vmem:[%s3996_s4 + $0x60] sm:$0xff]  ;;  %v3868_v33 = vld [vmem:[%s3996_s4 + $0x48] sm:$0xff] }
 0x1a4   :  { %v2923_v43 = vpop.f32.mrf.mxu0  ;;  %v2973_v46 = vpop.f32.mrf.mxu1 }
 0x1a5   :  { %v3704_v36 = vmax.f32 %v614_v34, 0.0  ;;  %v524_v42 = vadd.f32 %v2922_v39, %v3657_v7  ;;  %v3873_v34 = vld [vmem:[%s3996_s4 + $0x68] sm:$0xff] }
 0x1a6   :  { %v2924_v45 = vpop.f32.mrf.mxu0  ;;  %v2974_v50 = vpop.f32.mrf.mxu1 }
 0x1a7   :  { %1093 = vrot.lane.b32.xlu0 %v3660_v17, %s3295_s23  ;;  %1180 = vrot.lane.b32.xlu1 %v3660_v17, %s3296_s24  ;;  %v619_v44 = vadd.f32 %v2972_v26, %v524_v42  ;;  %v2925_v48 = vadd.f32 %v2924_v45, %v2923_v43  ;;  %v2975_v55 = vadd.f32 %v2974_v50, %v2973_v46 }
 0x1a8   :  { %v2926_v49 = vpop.f32.mrf.mxu0  ;;  %v2976_v56 = vpop.f32.mrf.mxu1 }
 0x1a9   :  { %v3723_v47 = vmax.f32 %v619_v44, 0.0  ;;  %v529_v53 = vadd.f32 %v2925_v48, %v3657_v7 }
 0x1aa   :  { %v2927_v54 = vpop.f32.mrf.mxu0  ;;  %v2977_v61 = vpop.f32.mrf.mxu1 }
 0x1ab   :  { %1267 = vrot.lane.b32.xlu0 %v3660_v17, %s3297_s25  ;;  %647 = vrot.lane.b32.xlu1 %v3689_v29, %s3292_s18  ;;  %v624_v57 = vadd.f32 %v2975_v55, %v529_v53  ;;  %v2928_v58 = vadd.f32 %v2927_v54, %v2926_v49  ;;  %v2978_v0 = vadd.f32 %v2977_v61, %v2976_v56 }
 0x1ad   :  { %v3738_v62 = vmax.f32 %v624_v57, 0.0  ;;  %v534_v63 = vadd.f32 %v2928_v58, %v3657_v7  ;;  %v3787_v7 = vld [vmem:[%s3996_s4 + $0x50] sm:$0xff] }
 0x1af   :  { %927 = vrot.lane.b32.xlu0 %v3689_v29, %s3293_s3  ;;  %741 = vrot.lane.b32.xlu1 %v3689_v29, %s3291_s0  ;;  %v629_v1 = vadd.f32 %v2978_v0, %v534_v63  ;;  %v2682_v0 = vld [vmem:[%s3997_s5] sm:$0xff] }
 0x1b1   :  { %v3749_v51 = vmax.f32 %v629_v1, 0.0  ;;  %v2683_v1 = vld [vmem:[%s3997_s5 + $0x8] sm:$0xff]  ;;  %s3298_s5 = smov 1  }
 0x1b3   :  { %1269 = vrot.lane.b32.xlu0 %v3689_v29, %s3297_s25  ;;  %834 = vrot.lane.b32.xlu1 %v3689_v29, %s3294_s19 }
 0x1b7   :  { %1443 = vrot.lane.b32.xlu0 %v3704_v36, %s3291_s0  ;;  %1095 = vrot.lane.b32.xlu1 %v3689_v29, %s3295_s23 }
 0x1bb   :  { %1605 = vrot.lane.b32.xlu0 %v3704_v36, %s3293_s3  ;;  %1182 = vrot.lane.b32.xlu1 %v3689_v29, %s3296_s24 }
 0x1bf   :  { %1761 = vrot.lane.b32.xlu0 %v3704_v36, %s3295_s23  ;;  %1362 = vrot.lane.b32.xlu1 %v3704_v36, %s3292_s18 }
 0x1c3   :  { %1923 = vrot.lane.b32.xlu0 %v3704_v36, %s3297_s25  ;;  %1524 = vrot.lane.b32.xlu1 %v3704_v36, %s3294_s19 }
 0x1c7   :  { %1445 = vrot.lane.b32.xlu0 %v3723_v47, %s3291_s0  ;;  %1842 = vrot.lane.b32.xlu1 %v3704_v36, %s3296_s24 }
 0x1cb   :  { %1607 = vrot.lane.b32.xlu0 %v3723_v47, %s3293_s3  ;;  %1364 = vrot.lane.b32.xlu1 %v3723_v47, %s3292_s18 }
 0x1cf   :  { %1925 = vrot.lane.b32.xlu0 %v3723_v47, %s3297_s25  ;;  %1526 = vrot.lane.b32.xlu1 %v3723_v47, %s3294_s19 }
 0x1d3   :  { %2093 = vrot.lane.b32.xlu0 %v3738_v62, %s3291_s0  ;;  %1763 = vrot.lane.b32.xlu1 %v3723_v47, %s3295_s23 }
 0x1d7   :  { %2255 = vrot.lane.b32.xlu0 %v3738_v62, %s3293_s3  ;;  %1844 = vrot.lane.b32.xlu1 %v3723_v47, %s3296_s24 }
 0x1db   :  { %2095 = vrot.lane.b32.xlu0 %v3749_v51, %s3291_s0  ;;  %2012 = vrot.lane.b32.xlu1 %v3738_v62, %s3292_s18 }
 0x1df   :  { %2257 = vrot.lane.b32.xlu0 %v3749_v51, %s3293_s3  ;;  %2174 = vrot.lane.b32.xlu1 %v3738_v62, %s3294_s19 }
 0x1e3   :  { %2411 = vrot.lane.b32.xlu0 %v3738_v62, %s3295_s23  ;;  %2014 = vrot.lane.b32.xlu1 %v3749_v51, %s3292_s18 }
 0x1e7   :  { %2575 = vrot.lane.b32.xlu0 %v3749_v51, %s3297_s25  ;;  %2176 = vrot.lane.b32.xlu1 %v3749_v51, %s3294_s19 }
 0x1eb   :  { %2573 = vrot.lane.b32.xlu0 %v3738_v62, %s3297_s25  ;;  %2413 = vrot.lane.b32.xlu1 %v3749_v51, %s3295_s23 }
 0x1ef   :  { %2494 = vrot.lane.b32.xlu1 %v3749_v51, %s3296_s24  ;;  %2691 = vperm.xlu0 %3259, %v2683_v1  }
 0x1f3   :  { %2492 = vrot.lane.b32.xlu1 %v3738_v62, %s3296_s24 }
 0x1f7   :  { %2686 = vperm.xlu1 %3258, %v2682_v0  }
 0x211   :  { %v740_v2 = vpop.permute.xlu0 %739  ;;  %v646_v40 = vpop.permute.xlu1 %645 }
 0x215   :  { %v926_v52 = vpop.permute.xlu0 %925  ;;  %v833_v3 = vpop.permute.xlu1 %832 }
 0x219   :  { %v1094_v4 = vpop.permute.xlu0 %1093  ;;  %v3775_v59 = vpop.permute.xlu1 %1180 }
 0x21d   :  { %v3777_v60 = vpop.permute.xlu0 %1267  ;;  %v648_v5 = vpop.permute.xlu1 %647 }
 0x21e   :  { %3075 = vmatprep.subr.mxu0 %v648_v5 }
 0x21f   :  { %3076 = vmatpush3.msra.mxu0 %v648_v5 }
 0x220   :  { %3077 = vmatprep.subr.mxu0 %v646_v40 }
 0x221   :  { %v928_v8 = vpop.permute.xlu0 %927  ;;  %3078 = vmatpush3.msra.mxu0 %v646_v40  ;;  %v742_v9 = vpop.permute.xlu1 %741 }
 0x222   :  { %3082 = vmatprep.subr.mxu1 %v742_v9  ;;  %3080 = vmatmul.mubr.msk.f32.vlgmr.msra.gmra.mxu0 %vm651_vm1, %v3782_v6 }
 0x223   :  { %3083 = vmatpush3.msra.mxu1 %v742_v9  ;;  %3093 = vmatprep.mubr.msk.f32.mxu0 %vm651_vm1, %v3787_v7 }
 0x224   :  { %3084 = vmatprep.subr.mxu1 %v740_v2 }
 0x225   :  { %v1270_v11 = vpop.permute.xlu0 %1269  ;;  %3085 = vmatpush3.msra.mxu1 %v740_v2  ;;  %v835_v12 = vpop.permute.xlu1 %834 }
 0x226   :  { %3089 = vmatprep.subr.mxu0 %v835_v12  ;;  %3096 = vmatprep.subr.mxu1 %v928_v8 }
 0x227   :  { %3087 = vmatmul.mubr.msk.f32.vlgmr.msra.gmra.mxu1 %vm651_vm1, %v3796_v10  ;;  %3090 = vmatpush3.msra.mxu0 %v835_v12 }
 0x228   :  { %3097 = vmatpush3.msra.mxu1 %v928_v8  ;;  %3091 = vmatprep.subr.mxu0 %v833_v3 }
 0x229   :  { %3098 = vmatprep.subr.mxu1 %v926_v52  ;;  %v1444_v14 = vpop.permute.xlu0 %1443  ;;  %3092 = vmatpush3.msra.mxu0 %v833_v3  ;;  %v1096_v15 = vpop.permute.xlu1 %1095 }
 0x22a   :  { %3099 = vmatpush3.msra.mxu1 %v926_v52  ;;  %3100 = vmatprep.mubr.msk.f32.mxu1 %vm651_vm1, %v3803_v13 }
 0x22b   :  { %3103 = vmatprep.subr.mxu0 %v3689_v29  ;;  %3110 = vmatprep.subr.mxu1 %v1096_v15 }
 0x22c   :  { %3094 = vmatmul.mubr.msk.f32.vlgmr.msra.gmra.mxu0 %vm651_vm1, %v3808_v16  ;;  %3101 = vmatmul.mubr.msk.f32.vlgmr.msra.gmra.mxu1 %vm651_vm1, %v3813_v18 }
 0x22d   :  { %3104 = vmatpush3.msra.mxu0 %v3689_v29  ;;  %3111 = vmatpush3.msra.mxu1 %v1096_v15  ;;  %v1606_v19 = vpop.permute.xlu0 %1605  ;;  %v1183_v20 = vpop.permute.xlu1 %1182 }
 0x22e   :  { %3105 = vmatprep.subr.mxu0 %v3660_v17  ;;  %3112 = vmatprep.subr.mxu1 %v1094_v4 }
 0x22f   :  { %3106 = vmatpush3.msra.mxu0 %v3660_v17  ;;  %3113 = vmatpush3.msra.mxu1 %v1094_v4 }
 0x230   :  { %3107 = vmatprep.mubr.msk.f32.mxu0 %vm651_vm1, %v3826_v21  ;;  %3114 = vmatprep.mubr.msk.f32.mxu1 %vm651_vm1, %v3831_v22 }
 0x231   :  { %3117 = vmatprep.subr.mxu0 %v1183_v20  ;;  %3124 = vmatprep.subr.mxu1 %v1270_v11  ;;  %v1762_v28 = vpop.permute.xlu0 %1761  ;;  %v1363_v30 = vpop.permute.xlu1 %1362 }
 0x232   :  { %3108 = vmatmul.mubr.msk.f32.vlgmr.msra.gmra.mxu0 %vm651_vm1, %v3838_v23  ;;  %3115 = vmatmul.mubr.msk.f32.vlgmr.msra.gmra.mxu1 %vm651_vm1, %v3843_v27 }
 0x233   :  { %3118 = vmatpush3.msra.mxu0 %v1183_v20  ;;  %3125 = vmatpush3.msra.mxu1 %v1270_v11 }
 0x234   :  { %3119 = vmatprep.subr.mxu0 %v3775_v59  ;;  %3126 = vmatprep.subr.mxu1 %v3777_v60 }
 0x235   :  { %3120 = vmatpush3.msra.mxu0 %v3775_v59  ;;  %3127 = vmatpush3.msra.mxu1 %v3777_v60  ;;  %v1924_v35 = vpop.permute.xlu0 %1923  ;;  %v1525_v37 = vpop.permute.xlu1 %1524 }
 0x236   :  { %3121 = vmatprep.mubr.msk.f32.mxu0 %vm651_vm1, %v3856_v31  ;;  %3128 = vmatprep.mubr.msk.f32.mxu1 %vm651_vm1, %v3861_v32 }
 0x237   :  { %3122 = vmatmul.mubr.msk.f32.vlgmr.msra.gmra.mxu0 %vm651_vm1, %v3868_v33  ;;  %3129 = vmatmul.mubr.msk.f32.vlgmr.msra.gmra.mxu1 %vm651_vm1, %v3873_v34 }
 0x238   :  { %3142 = vmatprep.mubr.msk.f32.mxu1 %vm651_vm1, %v3679_v25  ;;  %3135 = vmatprep.mubr.msk.f32.mxu0 %vm651_vm1, %v3674_v24 }
 0x239   :  { %v1446_v38 = vpop.permute.xlu0 %1445  ;;  %v1843_v39 = vpop.permute.xlu1 %1842 }
 0x23a   :  { %3138 = vmatprep.subr.mxu1 %v1446_v38 }
 0x23b   :  { %3139 = vmatpush3.msra.mxu1 %v1446_v38 }
 0x23c   :  { %3140 = vmatprep.subr.mxu1 %v1444_v14 }
 0x23d   :  { %v1608_v41 = vpop.permute.xlu0 %1607  ;;  %3141 = vmatpush3.msra.mxu1 %v1444_v14  ;;  %v1365_v42 = vpop.permute.xlu1 %1364 }
 0x23e   :  { %3131 = vmatprep.subr.mxu0 %v1365_v42  ;;  %3152 = vmatprep.subr.mxu1 %v1608_v41 }
 0x23f   :  { %3132 = vmatpush3.msra.mxu0 %v1365_v42  ;;  %3143 = vmatmul.mubr.msk.f32.vlgmr.msra.gmra.mxu1 %vm651_vm1, %v3796_v10 }
 0x240   :  { %3153 = vmatpush3.msra.mxu1 %v1608_v41  ;;  %3133 = vmatprep.subr.mxu0 %v1363_v30 }
 0x241   :  { %3154 = vmatprep.subr.mxu1 %v1606_v19  ;;  %v1926_v43 = vpop.permute.xlu0 %1925  ;;  %3134 = vmatpush3.msra.mxu0 %v1363_v30  ;;  %v1527_v26 = vpop.permute.xlu1 %1526 }
 0x242   :  { %3155 = vmatpush3.msra.mxu1 %v1606_v19  ;;  %3136 = vmatmul.mubr.msk.f32.vlgmr.msra.gmra.mxu0 %vm651_vm1, %v3782_v6 }
 0x243   :  { %3145 = vmatprep.subr.mxu0 %v1527_v26  ;;  %3149 = vmatprep.mubr.msk.f32.mxu0 %vm651_vm1, %v3787_v7 }
 0x244   :  { %3146 = vmatpush3.msra.mxu0 %v1527_v26  ;;  %3156 = vmatprep.mubr.msk.f32.mxu1 %vm651_vm1, %v3803_v13 }
 0x245   :  { %3147 = vmatprep.subr.mxu0 %v1525_v37  ;;  %v2094_v44 = vpop.permute.xlu0 %2093  ;;  %v1764_v45 = vpop.permute.xlu1 %1763  ;;  %3157 = vmatmul.mubr.msk.f32.vlgmr.msra.gmra.mxu1 %vm651_vm1, %v3813_v18 }
 0x246   :  { %3148 = vmatpush3.msra.mxu0 %v1525_v37  ;;  %3166 = vmatprep.subr.mxu1 %v1764_v45 }
 0x247   :  { %3150 = vmatmul.mubr.msk.f32.vlgmr.msra.gmra.mxu0 %vm651_vm1, %v3808_v16  ;;  %3159 = vmatprep.subr.mxu0 %v3723_v47 }
 0x248   :  { %3160 = vmatpush3.msra.mxu0 %v3723_v47  ;;  %3167 = vmatpush3.msra.mxu1 %v1764_v45 }
 0x249   :  { %3161 = vmatprep.subr.mxu0 %v3704_v36  ;;  %3168 = vmatprep.subr.mxu1 %v1762_v28  ;;  %v2256_v46 = vpop.permute.xlu0 %2255  ;;  %v1845_v48 = vpop.permute.xlu1 %1844 }
 0x24a   :  { %3162 = vmatpush3.msra.mxu0 %v3704_v36  ;;  %3163 = vmatprep.mubr.msk.f32.mxu0 %vm651_vm1, %v3826_v21 }
 0x24b   :  { %3169 = vmatpush3.msra.mxu1 %v1762_v28  ;;  %3170 = vmatprep.mubr.msk.f32.mxu1 %vm651_vm1, %v3831_v22 }
 0x24c   :  { %3164 = vmatmul.mubr.msk.f32.vlgmr.msra.gmra.mxu0 %vm651_vm1, %v3838_v23  ;;  %3171 = vmatmul.mubr.msk.f32.vlgmr.msra.gmra.mxu1 %vm651_vm1, %v3843_v27 }
 0x24d   :  { %3173 = vmatprep.subr.mxu0 %v1845_v48  ;;  %3180 = vmatprep.subr.mxu1 %v1926_v43  ;;  %v2013_v49 = vpop.permute.xlu1 %2012  ;;  %v2096_v50 = vpop.permute.xlu0 %2095 }
 0x24e   :  { %3174 = vmatpush3.msra.mxu0 %v1845_v48  ;;  %3181 = vmatpush3.msra.mxu1 %v1926_v43 }
 0x24f   :  { %3175 = vmatprep.subr.mxu0 %v1843_v39  ;;  %3182 = vmatprep.subr.mxu1 %v1924_v35 }
 0x250   :  { %3176 = vmatpush3.msra.mxu0 %v1843_v39  ;;  %3177 = vmatprep.mubr.msk.f32.mxu0 %vm651_vm1, %v3856_v31 }
 0x251   :  { %3183 = vmatpush3.msra.mxu1 %v1924_v35  ;;  %3184 = vmatprep.mubr.msk.f32.mxu1 %vm651_vm1, %v3861_v32  ;;  %v2175_v53 = vpop.permute.xlu1 %2174  ;;  %v2258_v54 = vpop.permute.xlu0 %2257 }
 0x252   :  { %3178 = vmatmul.mubr.msk.f32.vlgmr.msra.gmra.mxu0 %vm651_vm1, %v3868_v33  ;;  %3185 = vmatmul.mubr.msk.f32.vlgmr.msra.gmra.mxu1 %vm651_vm1, %v3873_v34 }
 0x253   :  { %3194 = vmatprep.subr.mxu1 %v2096_v50  ;;  %3198 = vmatprep.mubr.msk.f32.mxu1 %vm651_vm1, %v3679_v25 }
 0x254   :  { %3195 = vmatpush3.msra.mxu1 %v2096_v50  ;;  %3191 = vmatprep.mubr.msk.f32.mxu0 %vm651_vm1, %v3674_v24 }
 0x255   :  { %3196 = vmatprep.subr.mxu1 %v2094_v44  ;;  %v2015_v55 = vpop.permute.xlu1 %2014  ;;  %v2412_v25 = vpop.permute.xlu0 %2411 }
 0x256   :  { %3197 = vmatpush3.msra.mxu1 %v2094_v44  ;;  %3187 = vmatprep.subr.mxu0 %v2015_v55 }
 0x257   :  { %3208 = vmatprep.subr.mxu1 %v2258_v54  ;;  %3199 = vmatmul.mubr.msk.f32.vlgmr.msra.gmra.mxu1 %vm651_vm1, %v3796_v10 }
 0x258   :  { %3209 = vmatpush3.msra.mxu1 %v2258_v54  ;;  %3188 = vmatpush3.msra.mxu0 %v2015_v55 }
 0x259   :  { %3210 = vmatprep.subr.mxu1 %v2256_v46  ;;  %3189 = vmatprep.subr.mxu0 %v2013_v49  ;;  %v2177_v56 = vpop.permute.xlu1 %2176  ;;  %v2576_v57 = vpop.permute.xlu0 %2575 }
 0x25a   :  { %3211 = vmatpush3.msra.mxu1 %v2256_v46  ;;  %3190 = vmatpush3.msra.mxu0 %v2013_v49 }
 0x25b   :  { %3192 = vmatmul.mubr.msk.f32.vlgmr.msra.gmra.mxu0 %vm651_vm1, %v3782_v6  ;;  %3201 = vmatprep.subr.mxu0 %v2177_v56 }
 0x25c   :  { %3202 = vmatpush3.msra.mxu0 %v2177_v56  ;;  %3205 = vmatprep.mubr.msk.f32.mxu0 %vm651_vm1, %v3787_v7 }
 0x25d   :  { %3203 = vmatprep.subr.mxu0 %v2175_v53  ;;  %3212 = vmatprep.mubr.msk.f32.mxu1 %vm651_vm1, %v3803_v13  ;;  %v2414_v24 = vpop.permute.xlu1 %2413  ;;  %v2574_v63 = vpop.permute.xlu0 %2573 }
 0x25e   :  { %3204 = vmatpush3.msra.mxu0 %v2175_v53  ;;  %3213 = vmatmul.mubr.msk.f32.vlgmr.msra.gmra.mxu1 %vm651_vm1, %v3813_v18 }
 0x25f   :  { %3206 = vmatmul.mubr.msk.f32.vlgmr.msra.gmra.mxu0 %vm651_vm1, %v3808_v16  ;;  %3215 = vmatprep.subr.mxu0 %v3749_v51 }
 0x260   :  { %3222 = vmatprep.subr.mxu1 %v2414_v24  ;;  %3216 = vmatpush3.msra.mxu0 %v3749_v51 }
 0x261   :  { %3223 = vmatpush3.msra.mxu1 %v2414_v24  ;;  %3217 = vmatprep.subr.mxu0 %v3738_v62  ;;  %v2495_v58 = vpop.permute.xlu1 %2494 }
 0x262   :  { %3224 = vmatprep.subr.mxu1 %v2412_v25  ;;  %3218 = vmatpush3.msra.mxu0 %v3738_v62 }
 0x263   :  { %3219 = vmatprep.mubr.msk.f32.mxu0 %vm651_vm1, %v3826_v21  ;;  %3225 = vmatpush3.msra.mxu1 %v2412_v25 }
 0x264   :  { %3226 = vmatprep.mubr.msk.f32.mxu1 %vm651_vm1, %v3831_v22  ;;  %3220 = vmatmul.mubr.msk.f32.vlgmr.msra.gmra.mxu0 %vm651_vm1, %v3838_v23 }
 0x265   :  { %3227 = vmatmul.mubr.msk.f32.vlgmr.msra.gmra.mxu1 %vm651_vm1, %v3843_v27  ;;  %3229 = vmatprep.subr.mxu0 %v2495_v58  ;;  %v2493_v61 = vpop.permute.xlu1 %2492 }
 0x266   :  { %3236 = vmatprep.subr.mxu1 %v2576_v57  ;;  %3230 = vmatpush3.msra.mxu0 %v2495_v58 }
 0x267   :  { %3237 = vmatpush3.msra.mxu1 %v2576_v57  ;;  %3240 = vmatprep.mubr.msk.f32.mxu1 %vm651_vm1, %v3861_v32 }
 0x268   :  { %3238 = vmatprep.subr.mxu1 %v2574_v63  ;;  %3231 = vmatprep.subr.mxu0 %v2493_v61 }
 0x269   :  { %3239 = vmatpush3.msra.mxu1 %v2574_v63  ;;  %3232 = vmatpush3.msra.mxu0 %v2493_v61 }
 0x26a   :  { %3241 = vmatmul.mubr.msk.f32.vlgmr.msra.gmra.mxu1 %vm651_vm1, %v3873_v34  ;;  %3233 = vmatprep.mubr.msk.f32.mxu0 %vm651_vm1, %v3856_v31 }
 0x26b   :  { %3234 = vmatmul.mubr.msk.f32.vlgmr.msra.gmra.mxu0 %vm651_vm1, %v3868_v33 }
 0x2e2   :  { %v3081_v2 = vpop.f32.mrf.mxu0 }
 0x2e4   :  { %v724_v52 = vpop.f32.mrf.mxu0 }
 0x2e7   :  { %v3088_v40 = vpop.f32.mrf.mxu1 }
 0x2e9   :  { %v817_v3 = vpop.f32.mrf.mxu1 }
 0x2ec   :  { %v3095_v4 = vpop.f32.mrf.mxu0  ;;  %v3102_v59 = vpop.f32.mrf.mxu1 }
 0x2ee   :  { %v910_v60 = vpop.f32.mrf.mxu0  ;;  %v1003_v5 = vpop.f32.mrf.mxu1 }
 0x2f2   :  { %v3109_v6 = vpop.f32.mrf.mxu0  ;;  %v3116_v7 = vpop.f32.mrf.mxu1 }
 0x2f3   :  { %v1090_v8 = vadd.f32 %v3109_v6, %v3081_v2  ;;  %v1177_v9 = vadd.f32 %v3116_v7, %v3088_v40 }
 0x2f4   :  { %v1084_v10 = vpop.f32.mrf.mxu0  ;;  %v1171_v11 = vpop.f32.mrf.mxu1 }
 0x2f5   :  { %v1355_v12 = vadd.f32 %v1177_v9, %v1090_v8  ;;  %v1085_v13 = vadd.f32 %v1084_v10, %v724_v52  ;;  %v1172_v14 = vadd.f32 %v1171_v11, %v817_v3 }
 0x2f7   :  { %v1354_v15 = vadd.f32 %v1172_v14, %v1085_v13  ;;  %v3123_v16 = vpop.f32.mrf.mxu0  ;;  %v3130_v18 = vpop.f32.mrf.mxu1 }
 0x2f8   :  { %v1264_v19 = vadd.f32 %v3123_v16, %v3095_v4  ;;  %v1351_v20 = vadd.f32 %v3130_v18, %v3102_v59 }
 0x2f9   :  { %v1258_v21 = vpop.f32.mrf.mxu0  ;;  %v1345_v22 = vpop.f32.mrf.mxu1 }
 0x2fa   :  { %v1357_v23 = vadd.f32 %v1351_v20, %v1264_v19  ;;  %v1259_v27 = vadd.f32 %v1258_v21, %v910_v60  ;;  %v1346_v28 = vadd.f32 %v1345_v22, %v1003_v5 }
 0x2fc   :  { %v3963_v30 = vadd.f32 %v1357_v23, %v1355_v12  ;;  %v1356_v31 = vadd.f32 %v1346_v28, %v1259_v27 }
 0x2fe   :  { %v3965_v32 = vadd.f32 %v1356_v31, %v1354_v15 }
 0x2ff   :  { %v3144_v33 = vpop.f32.mrf.mxu1 }
 0x301   :  { %v1515_v34 = vpop.f32.mrf.mxu1 }
 0x302   :  { %v3137_v35 = vpop.f32.mrf.mxu0 }
 0x304   :  { %v1434_v37 = vpop.f32.mrf.mxu0 }
 0x305   :  { %v3158_v38 = vpop.f32.mrf.mxu1 }
 0x307   :  { %v3151_v39 = vpop.f32.mrf.mxu0  ;;  %v1677_v41 = vpop.f32.mrf.mxu1 }
 0x309   :  { %v1596_v42 = vpop.f32.mrf.mxu0 }
 0x30c   :  { %v3165_v43 = vpop.f32.mrf.mxu0  ;;  %v3172_v26 = vpop.f32.mrf.mxu1 }
 0x30d   :  { %v1758_v46 = vadd.f32 %v3165_v43, %v3137_v35  ;;  %v1839_v48 = vadd.f32 %v3172_v26, %v3144_v33 }
 0x30e   :  { %v1752_v44 = vpop.f32.mrf.mxu0  ;;  %v1833_v45 = vpop.f32.mrf.mxu1 }
 0x30f   :  { %v2005_v55 = vadd.f32 %v1839_v48, %v1758_v46  ;;  %v1753_v56 = vadd.f32 %v1752_v44, %v1434_v37  ;;  %v1834_v57 = vadd.f32 %v1833_v45, %v1515_v34 }
 0x311   :  { %v2004_v40 = vadd.f32 %v1834_v57, %v1753_v56 }
 0x312   :  { %v3179_v49 = vpop.f32.mrf.mxu0  ;;  %v3186_v50 = vpop.f32.mrf.mxu1 }
 0x313   :  { %v1920_v53 = vadd.f32 %v3179_v49, %v3151_v39  ;;  %v2001_v54 = vadd.f32 %v3186_v50, %v3158_v38  ;;  %v2687_v38 = vpop.permute.xlu1 %2686 }
 0x314   :  { %v1914_v25 = vpop.f32.mrf.mxu0  ;;  %v1995_v24 = vpop.f32.mrf.mxu1 }
 0x315   :  { %v2007_v58 = vadd.f32 %v2001_v54, %v1920_v53  ;;  %v1915_v61 = vadd.f32 %v1914_v25, %v1596_v42  ;;  %v1996_v63 = vadd.f32 %v1995_v24, %v1677_v41  ;;  %v2692_v42 = vpop.permute.xlu0 %2691 }
 0x317   :  { %v2006_v0 = vadd.f32 %v1996_v63, %v1915_v61  ;;  %v2009_v1 = vadd.f32 %v2007_v58, %v2005_v55  ;;  %v3200_v2 = vpop.f32.mrf.mxu1 }
 0x319   :  { %2664 = vrot.lane.b32.xlu1 %v2009_v1, %s3298_s5  ;;  %v2165_v52 = vpop.f32.mrf.mxu1  ;;  %v2008_v3 = vadd.f32 %v2006_v0, %v2004_v40 }
 0x31b   :  { %v3193_v4 = vpop.f32.mrf.mxu0 }
 0x31d   :  { %2662 = vrot.lane.b32.xlu1 %v2008_v3, %s3298_s5  ;;  %v2084_v59 = vpop.f32.mrf.mxu0 }
 0x31e   :  { %v3214_v60 = vpop.f32.mrf.mxu1 }
 0x31f   :  { %v3207_v5 = vpop.f32.mrf.mxu0 }
 0x320   :  { %v2327_v7 = vpop.f32.mrf.mxu1 }
 0x321   :  { %v2246_v6 = vpop.f32.mrf.mxu0 }
 0x324   :  { %v3221_v8 = vpop.f32.mrf.mxu0 }
 0x325   :  { %v3228_v9 = vpop.f32.mrf.mxu1  ;;  %v2408_v12 = vadd.f32 %v3221_v8, %v3193_v4 }
 0x326   :  { %v2402_v11 = vpop.f32.mrf.mxu0  ;;  %v2489_v13 = vadd.f32 %v3228_v9, %v3200_v2 }
 0x327   :  { %v2483_v10 = vpop.f32.mrf.mxu1  ;;  %v2403_v16 = vadd.f32 %v2402_v11, %v2084_v59 }
 0x328   :  { %v2484_v18 = vadd.f32 %v2483_v10, %v2165_v52  ;;  %v2655_v23 = vadd.f32 %v2489_v13, %v2408_v12 }
 0x32a   :  { %v3242_v14 = vpop.f32.mrf.mxu1  ;;  %v2654_v33 = vadd.f32 %v2484_v18, %v2403_v16 }
 0x32b   :  { %v3235_v15 = vpop.f32.mrf.mxu0  ;;  %v2651_v19 = vadd.f32 %v3242_v14, %v3214_v60 }
 0x32c   :  { %v2570_v20 = vadd.f32 %v3235_v15, %v3207_v5  ;;  %v2645_v21 = vpop.f32.mrf.mxu1 }
 0x32d   :  { %v2564_v22 = vpop.f32.mrf.mxu0  ;;  %v2646_v28 = vadd.f32 %v2645_v21, %v2327_v7 }
 0x32e   :  { %v2657_v27 = vadd.f32 %v2651_v19, %v2570_v20  ;;  %v2565_v31 = vadd.f32 %v2564_v22, %v2246_v6 }
 0x330   :  { %v2656_v34 = vadd.f32 %v2646_v28, %v2565_v31  ;;  %v2659_v35 = vadd.f32 %v2657_v27, %v2655_v23 }
 0x332   :  { %2672 = vrot.lane.b32.xlu1 %v2659_v35, %s3299_s7  ;;  %v2658_v37 = vadd.f32 %v2656_v34, %v2654_v33 }
 0x334   :  { %2670 = vrot.lane.b32.xlu0 %v2658_v37, %s3299_s7 }
 0x38b   :  { %v2665_v39 = vpop.permute.xlu1 %2664 }
 0x38c   :  { %v2678_v43 = vsel %vm2676_vm2, %v3963_v30, %v2665_v39 }
 0x38f   :  { %v2663_v41 = vpop.permute.xlu1 %2662 }
 0x390   :  { %v2677_v45 = vsel %vm2676_vm2, %v3965_v32, %v2663_v41 }
 0x3a4   :  { %v2673_v26 = vpop.permute.xlu1 %2672 }
 0x3a5   :  { %v2681_v44 = vsel %vm2679_vm3, %v2678_v43, %v2673_v26 }
 0x3a6   :  { %v2695_v46 = vadd.f32 %v2692_v42, %v2681_v44  ;;  %v2671_v48 = vpop.permute.xlu0 %2670 }
 0x3a7   :  { %v2680_v49 = vsel %vm2679_vm3, %v2677_v45, %v2671_v48 }
 0x3a8   :  { %v2694_v50 = vadd.f32 %v2687_v38, %v2680_v49  ;;  %v2698_v53 = vsel %vm2696_vm4, %v2695_v46, -inf }
 0x3aa   :  { %v2697_v54 = vsel %vm2696_vm4, %v2694_v50, -inf }
 0x3ab   :  { %v2699_v55 = vmax.f32 %v2697_v54, %v2698_v53 }
 0x3ad   :  { %v2700_v56 = vrot.slane %v2699_v55, 4 }
 0x3af   :  { %v2701_v25 = vmax.f32 %v2699_v55, %v2700_v56 }
 0x3b1   :  { %v2702_v24 = vrot.slane %v2701_v25, 2 }
 0x3b3   :  { %v2703_v57 = vmax.f32 %v2701_v25, %v2702_v24 }
 0x3b5   :  { %v2704_v58 = vrot.slane %v2703_v57, 1 }
 0x3b7   :  { %v2705_v30 = vmax.f32 %v2703_v57, %v2704_v58 }
 0x3b9   :  { %v2706_v61 = vsub.f32 %v2694_v50, %v2705_v30  ;;  %v2707_v63 = vsub.f32 %v2695_v46, %v2705_v30 }
 0x3bb   :  { %v2708_v0 = vmul.f32 1.442695, %v2706_v61  ;;  %v2710_v32 = vmul.f32 1.442695, %v2707_v63 }
 0x3bd   :  { %3260 = vpow2.f32 %v2708_v0 }
 0x3be   :  { %3262 = vpow2.f32 %v2710_v32 }
 0x3ca   :  { %v3261_v1 = vpop.eup %3260 }
 0x3cb   :  { %v3263_v2 = vpop.eup %3262  ;;  %v2712_v40 = vsel %vm2696_vm4, %v3261_v1, 0.0 }
 0x3cc   :  { %v2713_v52 = vsel %vm2696_vm4, %v3263_v2, 0.0 }
 0x3cd   :  { %v2714_v3 = vadd.f32 %v2713_v52, %v2712_v40 }
 0x3cf   :  { %v2715_v4 = vrot.slane %v2714_v3, 4 }
 0x3d1   :  { %v2716_v59 = vadd.f32 %v2715_v4, %v2714_v3 }
 0x3d3   :  { %v2717_v60 = vrot.slane %v2716_v59, 2 }
 0x3d5   :  { %v2718_v5 = vadd.f32 %v2717_v60, %v2716_v59 }
 0x3d7   :  { %v2719_v6 = vrot.slane %v2718_v5, 1 }
 0x3d9   :  { %v2720_v7 = vadd.f32 %v2719_v6, %v2718_v5 }
 0x3db   :  { %3264 = vrcp.f32 %v2720_v7 }
 0x3e8   :  { %v3265_v8 = vpop.eup %3264 }
 0x3e9   :  { %v2723_v9 = vmul.f32 %v3265_v8, %v3263_v2  ;;  %v2722_v10 = vmul.f32 %v3265_v8, %v3261_v1 }
 0x3eb   :  { %2728 = vrot.lane.b32.xlu1 %v2723_v9, %s3292_s18  ;;  %2726 = vrot.lane.b32.xlu0 %v2722_v10, %s3292_s18  ;;  %s3300_s18 = smov [#allocation2]  }
 0x3ef   :  { %2732 = vrot.lane.b32.xlu1 %v2723_v9, %s3295_s23  ;;  %2730 = vrot.lane.b32.xlu0 %v2722_v10, %s3295_s23  ;;  %s2804_s23 = sshll.u32 %s3300_s18, 4  ;;  %s2805_s23 = int_to_ptr.vmem [resolvable:$true] %s2804_s23 }
 0x3f0   :  { %s3266_s8 = scalar_lea.vmem %s2805_s23, 64  ;;  %p3271_p1 = scmp.lt.s32.totalorder %s2805_s23, %s2805_s23 }
 0x3f1   :  { %p3267_p0 = scmp.ne.s32.totalorder %s2805_s23, %s3266_s8  ;;  %p3272_p2 = scmp.lt.s32.totalorder %s3266_s8, %s3266_s8 }
 0x3f3   :  { %2739 = vperm.xlu1 %3258, %v2723_v9   ;;  %2735 = vperm.xlu0 %3259, %v2722_v10   ;;  %p3273_p3 = por %p3272_p2, %p3271_p1 }
 0x3f5   :  { %p3274_p4 = pnand %p3273_p3, %p3267_p0 }
 0x45d   :  { %v2729_v11 = vpop.permute.xlu1 %2728  ;;  %v2727_v12 = vpop.permute.xlu0 %2726 }
 0x45e   :  { %2747 = vperm.xlu1 %3258, %v2729_v11   ;;  %2743 = vperm.xlu0 %3259, %v2727_v12  }
 0x461   :  { %v2733_v13 = vpop.permute.xlu1 %2732  ;;  %v2731_v14 = vpop.permute.xlu0 %2730 }
 0x462   :  { %2755 = vperm.xlu1 %3258, %v2733_v13   ;;  %2751 = vperm.xlu0 %3259, %v2731_v14  }
 0x46e   :  { %v2740_v15 = vpop.permute.xlu1 %2739  ;;  %v2736_v16 = vpop.permute.xlu0 %2735 }
 0x46f   :  { %v2759_v18 = vmul.f32 %v2740_v15, %v3689_v29  ;;  %v2758_v19 = vmul.f32 %v2736_v16, %v3660_v17 }
 0x471   :  { %v2766_v20 = vsel %vm2764_vm5, %v2759_v18, 0.0  ;;  %v2765_v21 = vsel %vm2764_vm5, %v2758_v19, 0.0 }
 0x472   :  { %v2767_v22 = vadd.f32 %v2766_v20, %v2765_v21 }
 0x474   :  { %v2768_v23 = vrot.slane %v2767_v22, 4 }
 0x476   :  { %v2769_v34 = vadd.f32 %v2768_v23, %v2767_v22 }
 0x478   :  { %v2770_v43 = vrot.slane %v2769_v34, 2 }
 0x47a   :  { %v2771_v48 = vadd.f32 %v2770_v43, %v2769_v34 }
 0x47c   :  { %v2772_v55 = vrot.slane %v2771_v48, 1 }
 0x4d9   :  { %v2748_v27 = vpop.permute.xlu1 %2747  ;;  %v2744_v28 = vpop.permute.xlu0 %2743 }
 0x4da   :  { %v2761_v31 = vmul.f32 %v2748_v27, %v3723_v47  ;;  %v2760_v33 = vmul.f32 %v2744_v28, %v3704_v36 }
 0x4dc   :  { %v2775_v35 = vsel %vm2764_vm5, %v2761_v31, 0.0  ;;  %v2774_v29 = vsel %vm2764_vm5, %v2760_v33, 0.0 }
 0x4dd   :  { %v2776_v37 = vadd.f32 %v2775_v35, %v2774_v29  ;;  %v2756_v17 = vpop.permute.xlu1 %2755  ;;  %v2752_v38 = vpop.permute.xlu0 %2751 }
 0x4de   :  { %v2763_v39 = vmul.f32 %v2756_v17, %v3749_v51  ;;  %v2762_v41 = vmul.f32 %v2752_v38, %v3738_v62  ;;  %v2773_v62 = vadd.f32 %v2772_v55, %v2771_v48 }
 0x4df   :  { %v2777_v42 = vrot.slane %v2776_v37, 4 }
 0x4e0   :  { %v2784_v26 = vsel %vm2764_vm5, %v2763_v39, 0.0  ;;  %v2783_v47 = vsel %vm2764_vm5, %v2762_v41, 0.0 }
 0x4e1   :  { %v2778_v44 = vadd.f32 %v2777_v42, %v2776_v37  ;;  %v2785_v36 = vadd.f32 %v2784_v26, %v2783_v47 }
 0x4e3   :  { %v2779_v45 = vrot.slane %v2778_v44, 2  ;;  %v2786_v46 = vrot.slane %v2785_v36, 4 }
 0x4e5   :  { %v2780_v49 = vadd.f32 %v2779_v45, %v2778_v44  ;;  %v2787_v50 = vadd.f32 %v2786_v46, %v2785_v36 }
 0x4e7   :  { %v2781_v53 = vrot.slane %v2780_v49, 1  ;;  %v2788_v54 = vrot.slane %v2787_v50, 2 }
 0x4e9   :  { %v2789_v56 = vadd.f32 %v2788_v54, %v2787_v50  ;;  %v2782_v51 = vadd.f32 %v2781_v53, %v2780_v49 }
 0x4eb   :  { %v2790_v25 = vrot.slane %v2789_v56, 1  ;;  %v2793_v57 = vsel %vm2792_vm6, %v2773_v62, %v2782_v51 }
 0x4ed   :  { %v2791_v24 = vadd.f32 %v2790_v25, %v2789_v56 }
 0x4ef   :  { %v2795_v58 = vsel %vm2794_vm7, %v2793_v57, %v2791_v24 }
 0x4f0   :  { %2797 = vst.msk [vmem:[#allocation2] sm:$0x7] %vm2796_vm8, %v2795_v58 }
 0x4f1   :  { %3277 = shalt.err (!%p3274_p4)
}
 0x4f2   :  { %2807 = dma.vmem_to_hbm [thread:$0]  %s2805_s23, 64, %s3998_s6, [#allocation3]  }
 0x4f3   :  { %3286 = dma.done.wait [#allocation3], 64  }
 0x4f4   :  { %3287 = vsyncadd [#allocation3], 4294967232 }
 0x4f5   :  { %2811 = vsyncpa [#allocation3], 1 }

</bundles_post_ra>
